<compile_context>
chip_gen: v6e
topology: v6e:2x2x1
jax: 0.10.0
libtpu: 0.0.40
codegen_flags: <defaults>
</compile_context>

<pallas_src>
import jax
import jax.numpy as jnp
from jax.experimental import pallas as pl
from jax.experimental.pallas import tpu as pltpu


# ----------------------------------------------------------------------------
# Fused Pallas kernel (all layers + linear epilogue, time loop inside)
# ----------------------------------------------------------------------------
def _make_fused_kernel(num_layers, seq_len, hidden):
    """Builds the fused kernel for a static (num_layers, T, H) config.

    Ref order: x, (w_packed, bias) * num_layers, w_out, b_out, out,
               h_sc, c_sc, seq_sc
    """
    H = hidden
    T = seq_len
    unroll = T <= 32  # short fixed trip-count: unroll for LLO visibility

    def kernel(*refs):
        x_ref = refs[0]                                   # (T, B, F)   VMEM
        layer_refs = refs[1:1 + 2 * num_layers]           # per layer: w, b
        wo_ref = refs[1 + 2 * num_layers]                 # (H, O)
        bo_ref = refs[2 + 2 * num_layers]                 # (1, O)
        out_ref = refs[3 + 2 * num_layers]                # (B, O)
        h_sc = refs[4 + 2 * num_layers]                   # (B, H) scratch
        c_sc = refs[5 + 2 * num_layers]                   # (B, H) scratch
        seq_sc = refs[6 + 2 * num_layers]                 # (T, B, H) scratch

        for layer in range(num_layers):
            # Weights loaded once per layer, hoisted out of the time loop.
            w = layer_refs[2 * layer][...]                # (F_in + H, 4H)
            b = layer_refs[2 * layer + 1][...]            # (1, 4H)
            last = (layer == num_layers - 1)

            h_sc[...] = jnp.zeros_like(h_sc)
            c_sc[...] = jnp.zeros_like(c_sc)

            def step(t, carry, layer=layer, w=w, b=b, last=last):
                x_t = x_ref[t] if layer == 0 else seq_sc[t]     # (B, F_in)
                h_prev = h_sc[...]
                c_prev = c_sc[...]

                # Single fused gate matmul: (B, F_in+H) @ (F_in+H, 4H)
                xh = jnp.concatenate([x_t, h_prev], axis=-1)
                gates = (
                    jnp.dot(xh, w, preferred_element_type=jnp.float32) + b
                )

                i_g = jax.nn.sigmoid(gates[:, 0 * H:1 * H])
                f_g = jax.nn.sigmoid(gates[:, 1 * H:2 * H])
                g_g = jnp.tanh(gates[:, 2 * H:3 * H])
                o_g = jax.nn.sigmoid(gates[:, 3 * H:4 * H])

                c_new = f_g * c_prev + i_g * g_g
                h_new = o_g * jnp.tanh(c_new)

                c_sc[...] = c_new
                h_sc[...] = h_new
                if not last:
                    # Hidden sequence only needed to feed the next layer;
                    # it stays in VMEM (reused in place across layers).
                    seq_sc[t] = h_new
                return carry

            jax.lax.fori_loop(0, T, step, 0, unroll=unroll)

        # Linear epilogue on h_n[-1] only (the only data the model consumes).
        out_ref[...] = (
            jnp.dot(h_sc[...], wo_ref[...], preferred_element_type=jnp.float32)
            + bo_ref[...]
        ).astype(out_ref.dtype)

    return kernel


# ----------------------------------------------------------------------------
# Wrapper
# ----------------------------------------------------------------------------
def fused_lstm_linear(x_tbf, params):
    """x_tbf: (T, B, F) f32 time-major input -> (B, O) output."""
    T, B, F = x_tbf.shape
    lstm_params = params["lstm"]
    num_layers = len(lstm_params)
    H = lstm_params[0]["w_packed"].shape[1] // 4
    w_out = params["linear"]["w_t"]                       # (H, O)
    b_out = params["linear"]["b"]                         # (1, O)
    O = w_out.shape[1]

    inputs = [x_tbf]
    in_specs = [pl.BlockSpec((T, B, F), lambda: (0, 0, 0))]
    for lp in lstm_params:
        wp, bb = lp["w_packed"], lp["bias"]
        inputs += [wp, bb]
        in_specs += [
            pl.BlockSpec(wp.shape, lambda: (0, 0)),
            pl.BlockSpec(bb.shape, lambda: (0, 0)),
        ]
    inputs += [w_out, b_out]
    in_specs += [
        pl.BlockSpec(w_out.shape, lambda: (0, 0)),
        pl.BlockSpec(b_out.shape, lambda: (0, 0)),
    ]

    kernel = _make_fused_kernel(num_layers, T, H)

    return pl.pallas_call(
        kernel,
        out_shape=jax.ShapeDtypeStruct((B, O), jnp.float32),
        in_specs=in_specs,
        out_specs=pl.BlockSpec((B, O), lambda: (0, 0)),
        scratch_shapes=[
            pltpu.VMEM((B, H), jnp.float32),              # h carry
            pltpu.VMEM((B, H), jnp.float32),              # c carry
            pltpu.VMEM((T, B, H), jnp.float32),           # inter-layer seq
        ],
    )(*inputs)


def init_params(key, n_features, hidden_size, output_size, num_layers):
    """PyTorch-style init: U(-1/sqrt(H), 1/sqrt(H)); gate weights packed as
    [W_ih^T; W_hh^T] -> (in_dim + H, 4H) so the kernel does one matmul/step."""
    k = 1.0 / jnp.sqrt(jnp.float32(hidden_size))
    params = {"lstm": [], "linear": None}
    for layer in range(num_layers):
        in_dim = n_features if layer == 0 else hidden_size
        key, k1, k2, k3, k4 = jax.random.split(key, 5)
        w_ih = jax.random.uniform(k1, (4 * hidden_size, in_dim), jnp.float32, -k, k)
        w_hh = jax.random.uniform(k2, (4 * hidden_size, hidden_size), jnp.float32, -k, k)
        b_ih = jax.random.uniform(k3, (4 * hidden_size,), jnp.float32, -k, k)
        b_hh = jax.random.uniform(k4, (4 * hidden_size,), jnp.float32, -k, k)
        params["lstm"].append({
            "w_packed": jnp.concatenate([w_ih.T, w_hh.T], axis=0),   # (in+H, 4H)
            "bias": (b_ih + b_hh).reshape(1, 4 * hidden_size),       # (1, 4H)
        })
    key, k1, k2 = jax.random.split(key, 3)
    w = jax.random.uniform(k1, (output_size, hidden_size), jnp.float32, -k, k)
    b = jax.random.uniform(k2, (output_size,), jnp.float32, -k, k)
    params["linear"] = {"w_t": w.T, "b": b.reshape(1, output_size)}
    return params


@jax.jit
def lstm_model_forward(x_btf, params):
    """Replicates LSTMMdel.forward: _, (h_n, _) = lstm(x); linear(h_n[-1])."""
    # batch_first (B, T, F) -> time-major (T, B, F); negligible copy, lets the
    # kernel index the time axis as the leading ref dim.
    x = jnp.transpose(x_btf, (1, 0, 2)).astype(jnp.float32)
    return fused_lstm_linear(x, params)


# ----------------------------------------------------------------------------
# Pure-JAX reference (for sanity check)
# ----------------------------------------------------------------------------
def reference_forward(x_btf, params):
    x = jnp.transpose(x_btf, (1, 0, 2)).astype(jnp.float32)     # (T, B, F)
    T, B, _ = x.shape
    seq = x
    for lp in params["lstm"]:
        H = lp["w_packed"].shape[1] // 4
        h = jnp.zeros((B, H), jnp.float32)
        c = jnp.zeros((B, H), jnp.float32)
        outs = []
        for t in range(T):
            xh = jnp.concatenate([seq[t], h], axis=-1)
            g = xh @ lp["w_packed"] + lp["bias"]
            i = jax.nn.sigmoid(g[:, 0 * H:1 * H])
            f = jax.nn.sigmoid(g[:, 1 * H:2 * H])
            gg = jnp.tanh(g[:, 2 * H:3 * H])
            o = jax.nn.sigmoid(g[:, 3 * H:4 * H])
            c = f * c + i * gg
            h = o * jnp.tanh(c)
            outs.append(h)
        seq = jnp.stack(outs, axis=0)
    return seq[-1] @ params["linear"]["w_t"] + params["linear"]["b"]


if __name__ == "__main__":
    batch, seq_len = 2, 8
    n_features, hidden_size, output_size, num_layers = 4, 32, 3, 2

    key = jax.random.PRNGKey(0)
    key, xk, pk = jax.random.split(key, 3)
    x = jax.random.normal(xk, (batch, seq_len, n_features), jnp.float32)
    params = init_params(pk, n_features, hidden_size, output_size, num_layers)

    out = lstm_model_forward(x, params)
    out = jax.block_until_ready(out)

    ref = reference_forward(x, params)
    assert out.shape == (batch, output_size)
    assert jnp.allclose(out, ref, atol=1e-5, rtol=1e-5), (out, ref)

    print("KERNEL_OK")
</pallas_src>

<mosaic_0001>
module attributes {stable_mosaic.version = 11 : i64} {
  func.func @kernel(%arg0: memref<8x2x4xf32, #tpu.memory_space<vmem>>, %arg1: memref<36x128xf32, #tpu.memory_space<vmem>>, %arg2: memref<1x128xf32, #tpu.memory_space<vmem>>, %arg3: memref<64x128xf32, #tpu.memory_space<vmem>>, %arg4: memref<1x128xf32, #tpu.memory_space<vmem>>, %arg5: memref<32x3xf32, #tpu.memory_space<vmem>>, %arg6: memref<1x3xf32, #tpu.memory_space<vmem>>, %arg7: memref<2x3xf32, #tpu.memory_space<vmem>>, %arg8: memref<2x32xf32, #tpu.memory_space<vmem>>, %arg9: memref<2x32xf32, #tpu.memory_space<vmem>>, %arg10: memref<8x2x32xf32, #tpu.memory_space<vmem>>) attributes {dimension_semantics = [], scalar_prefetch = 0 : i64, scratch_operands = 3 : i64, tpu.core_type = #tpu.core_type<tc>} {
    %c0 = arith.constant 0 : index
    %c0_0 = arith.constant 0 : index
    %0 = vector.load %arg1[%c0, %c0_0] : memref<36x128xf32, #tpu.memory_space<vmem>>, vector<36x128xf32>
    %c0_1 = arith.constant 0 : index
    %c0_2 = arith.constant 0 : index
    %1 = vector.load %arg2[%c0_1, %c0_2] : memref<1x128xf32, #tpu.memory_space<vmem>>, vector<1x128xf32>
    %cst = arith.constant 0.000000e+00 : f32
    %2 = vector.broadcast %cst : f32 to vector<2x32xf32>
    %c0_3 = arith.constant 0 : index
    %c0_4 = arith.constant 0 : index
    %3 = vector.load %arg8[%c0_3, %c0_4] : memref<2x32xf32, #tpu.memory_space<vmem>>, vector<2x32xf32>
    tpu.vector_store %arg8[%c0_3, %c0_4], %2 {strides = array<i32>} : memref<2x32xf32, #tpu.memory_space<vmem>>, vector<2x32xf32>,
    %cst_5 = arith.constant 0.000000e+00 : f32
    %4 = vector.broadcast %cst_5 : f32 to vector<2x32xf32>
    %c0_6 = arith.constant 0 : index
    %c0_7 = arith.constant 0 : index
    %5 = vector.load %arg9[%c0_6, %c0_7] : memref<2x32xf32, #tpu.memory_space<vmem>>, vector<2x32xf32>
    tpu.vector_store %arg9[%c0_6, %c0_7], %4 {strides = array<i32>} : memref<2x32xf32, #tpu.memory_space<vmem>>, vector<2x32xf32>,
    %c0_i32 = arith.constant 0 : i32
    %6 = arith.index_cast %c0_i32 : i32 to index
    %c0_8 = arith.constant 0 : index
    %c0_9 = arith.constant 0 : index
    %7 = vector.load %arg0[%6, %c0_8, %c0_9] : memref<8x2x4xf32, #tpu.memory_space<vmem>>, vector<1x2x4xf32>
    %8 = vector.shape_cast %7 : vector<1x2x4xf32> to vector<2x4xf32>
    %c0_10 = arith.constant 0 : index
    %c0_11 = arith.constant 0 : index
    %9 = vector.load %arg8[%c0_10, %c0_11] : memref<2x32xf32, #tpu.memory_space<vmem>>, vector<2x32xf32>
    %c0_12 = arith.constant 0 : index
    %c0_13 = arith.constant 0 : index
    %10 = vector.load %arg9[%c0_12, %c0_13] : memref<2x32xf32, #tpu.memory_space<vmem>>, vector<2x32xf32>
    %11 = tpu.concatenate %8, %9 in 1 : vector<2x4xf32>, vector<2x32xf32> -> vector<2x36xf32>
    %cst_14 = arith.constant dense<0.000000e+00> : vector<2x128xf32>
    %12 = tpu.matmul %11, %0, %cst_14 {dimension_numbers = #tpu.dot_dimension_numbers<[1], [0], [0], [1], [0, 0, 1, 1], [], []>} : vector<2x36xf32>, vector<36x128xf32>, vector<2x128xf32> -> vector<2x128xf32>
    %13 = vector.broadcast %1 : vector<1x128xf32> to vector<2x128xf32>
    %14 = arith.addf %12, %13 : vector<2x128xf32>
    %15 = vector.extract_strided_slice %14 {offsets = [0, 0], sizes = [2, 32], strides = [1, 1]} : vector<2x128xf32> to vector<2x32xf32>
    %16 = arith.negf %15 : vector<2x32xf32>
    %17 = math.exp %16 : vector<2x32xf32>
    %cst_15 = arith.constant 1.000000e+00 : f32
    %18 = vector.broadcast %cst_15 : f32 to vector<2x32xf32>
    %19 = arith.addf %18, %17 : vector<2x32xf32>
    %20 = arith.divf %18, %19 : vector<2x32xf32>
    %21 = vector.extract_strided_slice %14 {offsets = [0, 32], sizes = [2, 32], strides = [1, 1]} : vector<2x128xf32> to vector<2x32xf32>
    %22 = arith.negf %21 : vector<2x32xf32>
    %23 = math.exp %22 : vector<2x32xf32>
    %cst_16 = arith.constant 1.000000e+00 : f32
    %24 = vector.broadcast %cst_16 : f32 to vector<2x32xf32>
    %25 = arith.addf %24, %23 : vector<2x32xf32>
    %26 = arith.divf %24, %25 : vector<2x32xf32>
    %27 = vector.extract_strided_slice %14 {offsets = [0, 64], sizes = [2, 32], strides = [1, 1]} : vector<2x128xf32> to vector<2x32xf32>
    %28 = math.tanh %27 : vector<2x32xf32>
    %29 = vector.extract_strided_slice %14 {offsets = [0, 96], sizes = [2, 32], strides = [1, 1]} : vector<2x128xf32> to vector<2x32xf32>
    %30 = arith.negf %29 : vector<2x32xf32>
    %31 = math.exp %30 : vector<2x32xf32>
    %cst_17 = arith.constant 1.000000e+00 : f32
    %32 = vector.broadcast %cst_17 : f32 to vector<2x32xf32>
    %33 = arith.addf %32, %31 : vector<2x32xf32>
    %34 = arith.divf %32, %33 : vector<2x32xf32>
    %35 = arith.mulf %26, %10 : vector<2x32xf32>
    %36 = arith.mulf %20, %28 : vector<2x32xf32>
    %37 = arith.addf %35, %36 : vector<2x32xf32>
    %38 = math.tanh %37 : vector<2x32xf32>
    %39 = arith.mulf %34, %38 : vector<2x32xf32>
    %c0_18 = arith.constant 0 : index
    %c0_19 = arith.constant 0 : index
    %40 = vector.load %arg9[%c0_18, %c0_19] : memref<2x32xf32, #tpu.memory_space<vmem>>, vector<2x32xf32>
    tpu.vector_store %arg9[%c0_18, %c0_19], %37 {strides = array<i32>} : memref<2x32xf32, #tpu.memory_space<vmem>>, vector<2x32xf32>,
    %c0_20 = arith.constant 0 : index
    %c0_21 = arith.constant 0 : index
    %41 = vector.load %arg8[%c0_20, %c0_21] : memref<2x32xf32, #tpu.memory_space<vmem>>, vector<2x32xf32>
    tpu.vector_store %arg8[%c0_20, %c0_21], %39 {strides = array<i32>} : memref<2x32xf32, #tpu.memory_space<vmem>>, vector<2x32xf32>,
    %42 = arith.index_cast %c0_i32 : i32 to index
    %c0_22 = arith.constant 0 : index
    %c0_23 = arith.constant 0 : index
    %43 = vector.load %arg10[%42, %c0_22, %c0_23] : memref<8x2x32xf32, #tpu.memory_space<vmem>>, vector<1x2x32xf32>
    %44 = vector.shape_cast %43 : vector<1x2x32xf32> to vector<2x32xf32>
    %45 = vector.shape_cast %39 : vector<2x32xf32> to vector<1x2x32xf32>
    tpu.vector_store %arg10[%42, %c0_22, %c0_23], %45 {strides = array<i32>} : memref<8x2x32xf32, #tpu.memory_space<vmem>>, vector<1x2x32xf32>,
    %c1_i32 = arith.constant 1 : i32
    %46 = arith.index_cast %c1_i32 : i32 to index
    %c0_24 = arith.constant 0 : index
    %c0_25 = arith.constant 0 : index
    %47 = vector.load %arg0[%46, %c0_24, %c0_25] : memref<8x2x4xf32, #tpu.memory_space<vmem>>, vector<1x2x4xf32>
    %48 = vector.shape_cast %47 : vector<1x2x4xf32> to vector<2x4xf32>
    %c0_26 = arith.constant 0 : index
    %c0_27 = arith.constant 0 : index
    %49 = vector.load %arg8[%c0_26, %c0_27] : memref<2x32xf32, #tpu.memory_space<vmem>>, vector<2x32xf32>
    %c0_28 = arith.constant 0 : index
    %c0_29 = arith.constant 0 : index
    %50 = vector.load %arg9[%c0_28, %c0_29] : memref<2x32xf32, #tpu.memory_space<vmem>>, vector<2x32xf32>
    %51 = tpu.concatenate %48, %49 in 1 : vector<2x4xf32>, vector<2x32xf32> -> vector<2x36xf32>
    %cst_30 = arith.constant dense<0.000000e+00> : vector<2x128xf32>
    %52 = tpu.matmul %51, %0, %cst_30 {dimension_numbers = #tpu.dot_dimension_numbers<[1], [0], [0], [1], [0, 0, 1, 1], [], []>} : vector<2x36xf32>, vector<36x128xf32>, vector<2x128xf32> -> vector<2x128xf32>
    %53 = vector.broadcast %1 : vector<1x128xf32> to vector<2x128xf32>
    %54 = arith.addf %52, %53 : vector<2x128xf32>
    %55 = vector.extract_strided_slice %54 {offsets = [0, 0], sizes = [2, 32], strides = [1, 1]} : vector<2x128xf32> to vector<2x32xf32>
    %56 = arith.negf %55 : vector<2x32xf32>
    %57 = math.exp %56 : vector<2x32xf32>
    %cst_31 = arith.constant 1.000000e+00 : f32
    %58 = vector.broadcast %cst_31 : f32 to vector<2x32xf32>
    %59 = arith.addf %58, %57 : vector<2x32xf32>
    %60 = arith.divf %58, %59 : vector<2x32xf32>
    %61 = vector.extract_strided_slice %54 {offsets = [0, 32], sizes = [2, 32], strides = [1, 1]} : vector<2x128xf32> to vector<2x32xf32>
    %62 = arith.negf %61 : vector<2x32xf32>
    %63 = math.exp %62 : vector<2x32xf32>
    %cst_32 = arith.constant 1.000000e+00 : f32
    %64 = vector.broadcast %cst_32 : f32 to vector<2x32xf32>
    %65 = arith.addf %64, %63 : vector<2x32xf32>
    %66 = arith.divf %64, %65 : vector<2x32xf32>
    %67 = vector.extract_strided_slice %54 {offsets = [0, 64], sizes = [2, 32], strides = [1, 1]} : vector<2x128xf32> to vector<2x32xf32>
    %68 = math.tanh %67 : vector<2x32xf32>
    %69 = vector.extract_strided_slice %54 {offsets = [0, 96], sizes = [2, 32], strides = [1, 1]} : vector<2x128xf32> to vector<2x32xf32>
    %70 = arith.negf %69 : vector<2x32xf32>
    %71 = math.exp %70 : vector<2x32xf32>
    %cst_33 = arith.constant 1.000000e+00 : f32
    %72 = vector.broadcast %cst_33 : f32 to vector<2x32xf32>
    %73 = arith.addf %72, %71 : vector<2x32xf32>
    %74 = arith.divf %72, %73 : vector<2x32xf32>
    %75 = arith.mulf %66, %50 : vector<2x32xf32>
    %76 = arith.mulf %60, %68 : vector<2x32xf32>
    %77 = arith.addf %75, %76 : vector<2x32xf32>
    %78 = math.tanh %77 : vector<2x32xf32>
    %79 = arith.mulf %74, %78 : vector<2x32xf32>
    %c0_34 = arith.constant 0 : index
    %c0_35 = arith.constant 0 : index
    %80 = vector.load %arg9[%c0_34, %c0_35] : memref<2x32xf32, #tpu.memory_space<vmem>>, vector<2x32xf32>
    tpu.vector_store %arg9[%c0_34, %c0_35], %77 {strides = array<i32>} : memref<2x32xf32, #tpu.memory_space<vmem>>, vector<2x32xf32>,
    %c0_36 = arith.constant 0 : index
    %c0_37 = arith.constant 0 : index
    %81 = vector.load %arg8[%c0_36, %c0_37] : memref<2x32xf32, #tpu.memory_space<vmem>>, vector<2x32xf32>
    tpu.vector_store %arg8[%c0_36, %c0_37], %79 {strides = array<i32>} : memref<2x32xf32, #tpu.memory_space<vmem>>, vector<2x32xf32>,
    %82 = arith.index_cast %c1_i32 : i32 to index
    %c0_38 = arith.constant 0 : index
    %c0_39 = arith.constant 0 : index
    %83 = vector.load %arg10[%82, %c0_38, %c0_39] : memref<8x2x32xf32, #tpu.memory_space<vmem>>, vector<1x2x32xf32>
    %84 = vector.shape_cast %83 : vector<1x2x32xf32> to vector<2x32xf32>
    %85 = vector.shape_cast %79 : vector<2x32xf32> to vector<1x2x32xf32>
    tpu.vector_store %arg10[%82, %c0_38, %c0_39], %85 {strides = array<i32>} : memref<8x2x32xf32, #tpu.memory_space<vmem>>, vector<1x2x32xf32>,
    %c2_i32 = arith.constant 2 : i32
    %86 = arith.index_cast %c2_i32 : i32 to index
    %c0_40 = arith.constant 0 : index
    %c0_41 = arith.constant 0 : index
    %87 = vector.load %arg0[%86, %c0_40, %c0_41] : memref<8x2x4xf32, #tpu.memory_space<vmem>>, vector<1x2x4xf32>
    %88 = vector.shape_cast %87 : vector<1x2x4xf32> to vector<2x4xf32>
    %c0_42 = arith.constant 0 : index
    %c0_43 = arith.constant 0 : index
    %89 = vector.load %arg8[%c0_42, %c0_43] : memref<2x32xf32, #tpu.memory_space<vmem>>, vector<2x32xf32>
    %c0_44 = arith.constant 0 : index
    %c0_45 = arith.constant 0 : index
    %90 = vector.load %arg9[%c0_44, %c0_45] : memref<2x32xf32, #tpu.memory_space<vmem>>, vector<2x32xf32>
    %91 = tpu.concatenate %88, %89 in 1 : vector<2x4xf32>, vector<2x32xf32> -> vector<2x36xf32>
    %cst_46 = arith.constant dense<0.000000e+00> : vector<2x128xf32>
    %92 = tpu.matmul %91, %0, %cst_46 {dimension_numbers = #tpu.dot_dimension_numbers<[1], [0], [0], [1], [0, 0, 1, 1], [], []>} : vector<2x36xf32>, vector<36x128xf32>, vector<2x128xf32> -> vector<2x128xf32>
    %93 = vector.broadcast %1 : vector<1x128xf32> to vector<2x128xf32>
    %94 = arith.addf %92, %93 : vector<2x128xf32>
    %95 = vector.extract_strided_slice %94 {offsets = [0, 0], sizes = [2, 32], strides = [1, 1]} : vector<2x128xf32> to vector<2x32xf32>
    %96 = arith.negf %95 : vector<2x32xf32>
    %97 = math.exp %96 : vector<2x32xf32>
    %cst_47 = arith.constant 1.000000e+00 : f32
    %98 = vector.broadcast %cst_47 : f32 to vector<2x32xf32>
    %99 = arith.addf %98, %97 : vector<2x32xf32>
    %100 = arith.divf %98, %99 : vector<2x32xf32>
    %101 = vector.extract_strided_slice %94 {offsets = [0, 32], sizes = [2, 32], strides = [1, 1]} : vector<2x128xf32> to vector<2x32xf32>
    %102 = arith.negf %101 : vector<2x32xf32>
    %103 = math.exp %102 : vector<2x32xf32>
    %cst_48 = arith.constant 1.000000e+00 : f32
    %104 = vector.broadcast %cst_48 : f32 to vector<2x32xf32>
    %105 = arith.addf %104, %103 : vector<2x32xf32>
    %106 = arith.divf %104, %105 : vector<2x32xf32>
    %107 = vector.extract_strided_slice %94 {offsets = [0, 64], sizes = [2, 32], strides = [1, 1]} : vector<2x128xf32> to vector<2x32xf32>
    %108 = math.tanh %107 : vector<2x32xf32>
    %109 = vector.extract_strided_slice %94 {offsets = [0, 96], sizes = [2, 32], strides = [1, 1]} : vector<2x128xf32> to vector<2x32xf32>
    %110 = arith.negf %109 : vector<2x32xf32>
    %111 = math.exp %110 : vector<2x32xf32>
    %cst_49 = arith.constant 1.000000e+00 : f32
    %112 = vector.broadcast %cst_49 : f32 to vector<2x32xf32>
    %113 = arith.addf %112, %111 : vector<2x32xf32>
    %114 = arith.divf %112, %113 : vector<2x32xf32>
    %115 = arith.mulf %106, %90 : vector<2x32xf32>
    %116 = arith.mulf %100, %108 : vector<2x32xf32>
    %117 = arith.addf %115, %116 : vector<2x32xf32>
    %118 = math.tanh %117 : vector<2x32xf32>
    %119 = arith.mulf %114, %118 : vector<2x32xf32>
    %c0_50 = arith.constant 0 : index
    %c0_51 = arith.constant 0 : index
    %120 = vector.load %arg9[%c0_50, %c0_51] : memref<2x32xf32, #tpu.memory_space<vmem>>, vector<2x32xf32>
    tpu.vector_store %arg9[%c0_50, %c0_51], %117 {strides = array<i32>} : memref<2x32xf32, #tpu.memory_space<vmem>>, vector<2x32xf32>,
    %c0_52 = arith.constant 0 : index
    %c0_53 = arith.constant 0 : index
    %121 = vector.load %arg8[%c0_52, %c0_53] : memref<2x32xf32, #tpu.memory_space<vmem>>, vector<2x32xf32>
    tpu.vector_store %arg8[%c0_52, %c0_53], %119 {strides = array<i32>} : memref<2x32xf32, #tpu.memory_space<vmem>>, vector<2x32xf32>,
    %122 = arith.index_cast %c2_i32 : i32 to index
    %c0_54 = arith.constant 0 : index
    %c0_55 = arith.constant 0 : index
    %123 = vector.load %arg10[%122, %c0_54, %c0_55] : memref<8x2x32xf32, #tpu.memory_space<vmem>>, vector<1x2x32xf32>
    %124 = vector.shape_cast %123 : vector<1x2x32xf32> to vector<2x32xf32>
    %125 = vector.shape_cast %119 : vector<2x32xf32> to vector<1x2x32xf32>
    tpu.vector_store %arg10[%122, %c0_54, %c0_55], %125 {strides = array<i32>} : memref<8x2x32xf32, #tpu.memory_space<vmem>>, vector<1x2x32xf32>,
    %c3_i32 = arith.constant 3 : i32
    %126 = arith.index_cast %c3_i32 : i32 to index
    %c0_56 = arith.constant 0 : index
    %c0_57 = arith.constant 0 : index
    %127 = vector.load %arg0[%126, %c0_56, %c0_57] : memref<8x2x4xf32, #tpu.memory_space<vmem>>, vector<1x2x4xf32>
    %128 = vector.shape_cast %127 : vector<1x2x4xf32> to vector<2x4xf32>
    %c0_58 = arith.constant 0 : index
    %c0_59 = arith.constant 0 : index
    %129 = vector.load %arg8[%c0_58, %c0_59] : memref<2x32xf32, #tpu.memory_space<vmem>>, vector<2x32xf32>
    %c0_60 = arith.constant 0 : index
    %c0_61 = arith.constant 0 : index
    %130 = vector.load %arg9[%c0_60, %c0_61] : memref<2x32xf32, #tpu.memory_space<vmem>>, vector<2x32xf32>
    %131 = tpu.concatenate %128, %129 in 1 : vector<2x4xf32>, vector<2x32xf32> -> vector<2x36xf32>
    %cst_62 = arith.constant dense<0.000000e+00> : vector<2x128xf32>
    %132 = tpu.matmul %131, %0, %cst_62 {dimension_numbers = #tpu.dot_dimension_numbers<[1], [0], [0], [1], [0, 0, 1, 1], [], []>} : vector<2x36xf32>, vector<36x128xf32>, vector<2x128xf32> -> vector<2x128xf32>
    %133 = vector.broadcast %1 : vector<1x128xf32> to vector<2x128xf32>
    %134 = arith.addf %132, %133 : vector<2x128xf32>
    %135 = vector.extract_strided_slice %134 {offsets = [0, 0], sizes = [2, 32], strides = [1, 1]} : vector<2x128xf32> to vector<2x32xf32>
    %136 = arith.negf %135 : vector<2x32xf32>
    %137 = math.exp %136 : vector<2x32xf32>
    %cst_63 = arith.constant 1.000000e+00 : f32
    %138 = vector.broadcast %cst_63 : f32 to vector<2x32xf32>
    %139 = arith.addf %138, %137 : vector<2x32xf32>
    %140 = arith.divf %138, %139 : vector<2x32xf32>
    %141 = vector.extract_strided_slice %134 {offsets = [0, 32], sizes = [2, 32], strides = [1, 1]} : vector<2x128xf32> to vector<2x32xf32>
    %142 = arith.negf %141 : vector<2x32xf32>
    %143 = math.exp %142 : vector<2x32xf32>
    %cst_64 = arith.constant 1.000000e+00 : f32
    %144 = vector.broadcast %cst_64 : f32 to vector<2x32xf32>
    %145 = arith.addf %144, %143 : vector<2x32xf32>
    %146 = arith.divf %144, %145 : vector<2x32xf32>
    %147 = vector.extract_strided_slice %134 {offsets = [0, 64], sizes = [2, 32], strides = [1, 1]} : vector<2x128xf32> to vector<2x32xf32>
    %148 = math.tanh %147 : vector<2x32xf32>
    %149 = vector.extract_strided_slice %134 {offsets = [0, 96], sizes = [2, 32], strides = [1, 1]} : vector<2x128xf32> to vector<2x32xf32>
    %150 = arith.negf %149 : vector<2x32xf32>
    %151 = math.exp %150 : vector<2x32xf32>
    %cst_65 = arith.constant 1.000000e+00 : f32
    %152 = vector.broadcast %cst_65 : f32 to vector<2x32xf32>
    %153 = arith.addf %152, %151 : vector<2x32xf32>
    %154 = arith.divf %152, %153 : vector<2x32xf32>
    %155 = arith.mulf %146, %130 : vector<2x32xf32>
    %156 = arith.mulf %140, %148 : vector<2x32xf32>
    %157 = arith.addf %155, %156 : vector<2x32xf32>
    %158 = math.tanh %157 : vector<2x32xf32>
    %159 = arith.mulf %154, %158 : vector<2x32xf32>
    %c0_66 = arith.constant 0 : index
    %c0_67 = arith.constant 0 : index
    %160 = vector.load %arg9[%c0_66, %c0_67] : memref<2x32xf32, #tpu.memory_space<vmem>>, vector<2x32xf32>
    tpu.vector_store %arg9[%c0_66, %c0_67], %157 {strides = array<i32>} : memref<2x32xf32, #tpu.memory_space<vmem>>, vector<2x32xf32>,
    %c0_68 = arith.constant 0 : index
    %c0_69 = arith.constant 0 : index
    %161 = vector.load %arg8[%c0_68, %c0_69] : memref<2x32xf32, #tpu.memory_space<vmem>>, vector<2x32xf32>
    tpu.vector_store %arg8[%c0_68, %c0_69], %159 {strides = array<i32>} : memref<2x32xf32, #tpu.memory_space<vmem>>, vector<2x32xf32>,
    %162 = arith.index_cast %c3_i32 : i32 to index
    %c0_70 = arith.constant 0 : index
    %c0_71 = arith.constant 0 : index
    %163 = vector.load %arg10[%162, %c0_70, %c0_71] : memref<8x2x32xf32, #tpu.memory_space<vmem>>, vector<1x2x32xf32>
    %164 = vector.shape_cast %163 : vector<1x2x32xf32> to vector<2x32xf32>
    %165 = vector.shape_cast %159 : vector<2x32xf32> to vector<1x2x32xf32>
    tpu.vector_store %arg10[%162, %c0_70, %c0_71], %165 {strides = array<i32>} : memref<8x2x32xf32, #tpu.memory_space<vmem>>, vector<1x2x32xf32>,
    %c4_i32 = arith.constant 4 : i32
    %166 = arith.index_cast %c4_i32 : i32 to index
    %c0_72 = arith.constant 0 : index
    %c0_73 = arith.constant 0 : index
    %167 = vector.load %arg0[%166, %c0_72, %c0_73] : memref<8x2x4xf32, #tpu.memory_space<vmem>>, vector<1x2x4xf32>
    %168 = vector.shape_cast %167 : vector<1x2x4xf32> to vector<2x4xf32>
    %c0_74 = arith.constant 0 : index
    %c0_75 = arith.constant 0 : index
    %169 = vector.load %arg8[%c0_74, %c0_75] : memref<2x32xf32, #tpu.memory_space<vmem>>, vector<2x32xf32>
    %c0_76 = arith.constant 0 : index
    %c0_77 = arith.constant 0 : index
    %170 = vector.load %arg9[%c0_76, %c0_77] : memref<2x32xf32, #tpu.memory_space<vmem>>, vector<2x32xf32>
    %171 = tpu.concatenate %168, %169 in 1 : vector<2x4xf32>, vector<2x32xf32> -> vector<2x36xf32>
    %cst_78 = arith.constant dense<0.000000e+00> : vector<2x128xf32>
    %172 = tpu.matmul %171, %0, %cst_78 {dimension_numbers = #tpu.dot_dimension_numbers<[1], [0], [0], [1], [0, 0, 1, 1], [], []>} : vector<2x36xf32>, vector<36x128xf32>, vector<2x128xf32> -> vector<2x128xf32>
    %173 = vector.broadcast %1 : vector<1x128xf32> to vector<2x128xf32>
    %174 = arith.addf %172, %173 : vector<2x128xf32>
    %175 = vector.extract_strided_slice %174 {offsets = [0, 0], sizes = [2, 32], strides = [1, 1]} : vector<2x128xf32> to vector<2x32xf32>
    %176 = arith.negf %175 : vector<2x32xf32>
    %177 = math.exp %176 : vector<2x32xf32>
    %cst_79 = arith.constant 1.000000e+00 : f32
    %178 = vector.broadcast %cst_79 : f32 to vector<2x32xf32>
    %179 = arith.addf %178, %177 : vector<2x32xf32>
    %180 = arith.divf %178, %179 : vector<2x32xf32>
    %181 = vector.extract_strided_slice %174 {offsets = [0, 32], sizes = [2, 32], strides = [1, 1]} : vector<2x128xf32> to vector<2x32xf32>
    %182 = arith.negf %181 : vector<2x32xf32>
    %183 = math.exp %182 : vector<2x32xf32>
    %cst_80 = arith.constant 1.000000e+00 : f32
    %184 = vector.broadcast %cst_80 : f32 to vector<2x32xf32>
    %185 = arith.addf %184, %183 : vector<2x32xf32>
    %186 = arith.divf %184, %185 : vector<2x32xf32>
    %187 = vector.extract_strided_slice %174 {offsets = [0, 64], sizes = [2, 32], strides = [1, 1]} : vector<2x128xf32> to vector<2x32xf32>
    %188 = math.tanh %187 : vector<2x32xf32>
    %189 = vector.extract_strided_slice %174 {offsets = [0, 96], sizes = [2, 32], strides = [1, 1]} : vector<2x128xf32> to vector<2x32xf32>
    %190 = arith.negf %189 : vector<2x32xf32>
    %191 = math.exp %190 : vector<2x32xf32>
    %cst_81 = arith.constant 1.000000e+00 : f32
    %192 = vector.broadcast %cst_81 : f32 to vector<2x32xf32>
    %193 = arith.addf %192, %191 : vector<2x32xf32>
    %194 = arith.divf %192, %193 : vector<2x32xf32>
    %195 = arith.mulf %186, %170 : vector<2x32xf32>
    %196 = arith.mulf %180, %188 : vector<2x32xf32>
    %197 = arith.addf %195, %196 : vector<2x32xf32>
    %198 = math.tanh %197 : vector<2x32xf32>
    %199 = arith.mulf %194, %198 : vector<2x32xf32>
    %c0_82 = arith.constant 0 : index
    %c0_83 = arith.constant 0 : index
    %200 = vector.load %arg9[%c0_82, %c0_83] : memref<2x32xf32, #tpu.memory_space<vmem>>, vector<2x32xf32>
    tpu.vector_store %arg9[%c0_82, %c0_83], %197 {strides = array<i32>} : memref<2x32xf32, #tpu.memory_space<vmem>>, vector<2x32xf32>,
    %c0_84 = arith.constant 0 : index
    %c0_85 = arith.constant 0 : index
    %201 = vector.load %arg8[%c0_84, %c0_85] : memref<2x32xf32, #tpu.memory_space<vmem>>, vector<2x32xf32>
    tpu.vector_store %arg8[%c0_84, %c0_85], %199 {strides = array<i32>} : memref<2x32xf32, #tpu.memory_space<vmem>>, vector<2x32xf32>,
    %202 = arith.index_cast %c4_i32 : i32 to index
    %c0_86 = arith.constant 0 : index
    %c0_87 = arith.constant 0 : index
    %203 = vector.load %arg10[%202, %c0_86, %c0_87] : memref<8x2x32xf32, #tpu.memory_space<vmem>>, vector<1x2x32xf32>
    %204 = vector.shape_cast %203 : vector<1x2x32xf32> to vector<2x32xf32>
    %205 = vector.shape_cast %199 : vector<2x32xf32> to vector<1x2x32xf32>
    tpu.vector_store %arg10[%202, %c0_86, %c0_87], %205 {strides = array<i32>} : memref<8x2x32xf32, #tpu.memory_space<vmem>>, vector<1x2x32xf32>,
    %c5_i32 = arith.constant 5 : i32
    %206 = arith.index_cast %c5_i32 : i32 to index
    %c0_88 = arith.constant 0 : index
    %c0_89 = arith.constant 0 : index
    %207 = vector.load %arg0[%206, %c0_88, %c0_89] : memref<8x2x4xf32, #tpu.memory_space<vmem>>, vector<1x2x4xf32>
    %208 = vector.shape_cast %207 : vector<1x2x4xf32> to vector<2x4xf32>
    %c0_90 = arith.constant 0 : index
    %c0_91 = arith.constant 0 : index
    %209 = vector.load %arg8[%c0_90, %c0_91] : memref<2x32xf32, #tpu.memory_space<vmem>>, vector<2x32xf32>
    %c0_92 = arith.constant 0 : index
    %c0_93 = arith.constant 0 : index
    %210 = vector.load %arg9[%c0_92, %c0_93] : memref<2x32xf32, #tpu.memory_space<vmem>>, vector<2x32xf32>
    %211 = tpu.concatenate %208, %209 in 1 : vector<2x4xf32>, vector<2x32xf32> -> vector<2x36xf32>
    %cst_94 = arith.constant dense<0.000000e+00> : vector<2x128xf32>
    %212 = tpu.matmul %211, %0, %cst_94 {dimension_numbers = #tpu.dot_dimension_numbers<[1], [0], [0], [1], [0, 0, 1, 1], [], []>} : vector<2x36xf32>, vector<36x128xf32>, vector<2x128xf32> -> vector<2x128xf32>
    %213 = vector.broadcast %1 : vector<1x128xf32> to vector<2x128xf32>
    %214 = arith.addf %212, %213 : vector<2x128xf32>
    %215 = vector.extract_strided_slice %214 {offsets = [0, 0], sizes = [2, 32], strides = [1, 1]} : vector<2x128xf32> to vector<2x32xf32>
    %216 = arith.negf %215 : vector<2x32xf32>
    %217 = math.exp %216 : vector<2x32xf32>
    %cst_95 = arith.constant 1.000000e+00 : f32
    %218 = vector.broadcast %cst_95 : f32 to vector<2x32xf32>
    %219 = arith.addf %218, %217 : vector<2x32xf32>
    %220 = arith.divf %218, %219 : vector<2x32xf32>
    %221 = vector.extract_strided_slice %214 {offsets = [0, 32], sizes = [2, 32], strides = [1, 1]} : vector<2x128xf32> to vector<2x32xf32>
    %222 = arith.negf %221 : vector<2x32xf32>
    %223 = math.exp %222 : vector<2x32xf32>
    %cst_96 = arith.constant 1.000000e+00 : f32
    %224 = vector.broadcast %cst_96 : f32 to vector<2x32xf32>
    %225 = arith.addf %224, %223 : vector<2x32xf32>
    %226 = arith.divf %224, %225 : vector<2x32xf32>
    %227 = vector.extract_strided_slice %214 {offsets = [0, 64], sizes = [2, 32], strides = [1, 1]} : vector<2x128xf32> to vector<2x32xf32>
    %228 = math.tanh %227 : vector<2x32xf32>
    %229 = vector.extract_strided_slice %214 {offsets = [0, 96], sizes = [2, 32], strides = [1, 1]} : vector<2x128xf32> to vector<2x32xf32>
    %230 = arith.negf %229 : vector<2x32xf32>
    %231 = math.exp %230 : vector<2x32xf32>
    %cst_97 = arith.constant 1.000000e+00 : f32
    %232 = vector.broadcast %cst_97 : f32 to vector<2x32xf32>
    %233 = arith.addf %232, %231 : vector<2x32xf32>
    %234 = arith.divf %232, %233 : vector<2x32xf32>
    %235 = arith.mulf %226, %210 : vector<2x32xf32>
    %236 = arith.mulf %220, %228 : vector<2x32xf32>
    %237 = arith.addf %235, %236 : vector<2x32xf32>
    %238 = math.tanh %237 : vector<2x32xf32>
    %239 = arith.mulf %234, %238 : vector<2x32xf32>
    %c0_98 = arith.constant 0 : index
    %c0_99 = arith.constant 0 : index
    %240 = vector.load %arg9[%c0_98, %c0_99] : memref<2x32xf32, #tpu.memory_space<vmem>>, vector<2x32xf32>
    tpu.vector_store %arg9[%c0_98, %c0_99], %237 {strides = array<i32>} : memref<2x32xf32, #tpu.memory_space<vmem>>, vector<2x32xf32>,
    %c0_100 = arith.constant 0 : index
    %c0_101 = arith.constant 0 : index
    %241 = vector.load %arg8[%c0_100, %c0_101] : memref<2x32xf32, #tpu.memory_space<vmem>>, vector<2x32xf32>
    tpu.vector_store %arg8[%c0_100, %c0_101], %239 {strides = array<i32>} : memref<2x32xf32, #tpu.memory_space<vmem>>, vector<2x32xf32>,
    %242 = arith.index_cast %c5_i32 : i32 to index
    %c0_102 = arith.constant 0 : index
    %c0_103 = arith.constant 0 : index
    %243 = vector.load %arg10[%242, %c0_102, %c0_103] : memref<8x2x32xf32, #tpu.memory_space<vmem>>, vector<1x2x32xf32>
    %244 = vector.shape_cast %243 : vector<1x2x32xf32> to vector<2x32xf32>
    %245 = vector.shape_cast %239 : vector<2x32xf32> to vector<1x2x32xf32>
    tpu.vector_store %arg10[%242, %c0_102, %c0_103], %245 {strides = array<i32>} : memref<8x2x32xf32, #tpu.memory_space<vmem>>, vector<1x2x32xf32>,
    %c6_i32 = arith.constant 6 : i32
    %246 = arith.index_cast %c6_i32 : i32 to index
    %c0_104 = arith.constant 0 : index
    %c0_105 = arith.constant 0 : index
    %247 = vector.load %arg0[%246, %c0_104, %c0_105] : memref<8x2x4xf32, #tpu.memory_space<vmem>>, vector<1x2x4xf32>
    %248 = vector.shape_cast %247 : vector<1x2x4xf32> to vector<2x4xf32>
    %c0_106 = arith.constant 0 : index
    %c0_107 = arith.constant 0 : index
    %249 = vector.load %arg8[%c0_106, %c0_107] : memref<2x32xf32, #tpu.memory_space<vmem>>, vector<2x32xf32>
    %c0_108 = arith.constant 0 : index
    %c0_109 = arith.constant 0 : index
    %250 = vector.load %arg9[%c0_108, %c0_109] : memref<2x32xf32, #tpu.memory_space<vmem>>, vector<2x32xf32>
    %251 = tpu.concatenate %248, %249 in 1 : vector<2x4xf32>, vector<2x32xf32> -> vector<2x36xf32>
    %cst_110 = arith.constant dense<0.000000e+00> : vector<2x128xf32>
    %252 = tpu.matmul %251, %0, %cst_110 {dimension_numbers = #tpu.dot_dimension_numbers<[1], [0], [0], [1], [0, 0, 1, 1], [], []>} : vector<2x36xf32>, vector<36x128xf32>, vector<2x128xf32> -> vector<2x128xf32>
    %253 = vector.broadcast %1 : vector<1x128xf32> to vector<2x128xf32>
    %254 = arith.addf %252, %253 : vector<2x128xf32>
    %255 = vector.extract_strided_slice %254 {offsets = [0, 0], sizes = [2, 32], strides = [1, 1]} : vector<2x128xf32> to vector<2x32xf32>
    %256 = arith.negf %255 : vector<2x32xf32>
    %257 = math.exp %256 : vector<2x32xf32>
    %cst_111 = arith.constant 1.000000e+00 : f32
    %258 = vector.broadcast %cst_111 : f32 to vector<2x32xf32>
    %259 = arith.addf %258, %257 : vector<2x32xf32>
    %260 = arith.divf %258, %259 : vector<2x32xf32>
    %261 = vector.extract_strided_slice %254 {offsets = [0, 32], sizes = [2, 32], strides = [1, 1]} : vector<2x128xf32> to vector<2x32xf32>
    %262 = arith.negf %261 : vector<2x32xf32>
    %263 = math.exp %262 : vector<2x32xf32>
    %cst_112 = arith.constant 1.000000e+00 : f32
    %264 = vector.broadcast %cst_112 : f32 to vector<2x32xf32>
    %265 = arith.addf %264, %263 : vector<2x32xf32>
    %266 = arith.divf %264, %265 : vector<2x32xf32>
    %267 = vector.extract_strided_slice %254 {offsets = [0, 64], sizes = [2, 32], strides = [1, 1]} : vector<2x128xf32> to vector<2x32xf32>
    %268 = math.tanh %267 : vector<2x32xf32>
    %269 = vector.extract_strided_slice %254 {offsets = [0, 96], sizes = [2, 32], strides = [1, 1]} : vector<2x128xf32> to vector<2x32xf32>
    %270 = arith.negf %269 : vector<2x32xf32>
    %271 = math.exp %270 : vector<2x32xf32>
    %cst_113 = arith.constant 1.000000e+00 : f32
    %272 = vector.broadcast %cst_113 : f32 to vector<2x32xf32>
    %273 = arith.addf %272, %271 : vector<2x32xf32>
    %274 = arith.divf %272, %273 : vector<2x32xf32>
    %275 = arith.mulf %266, %250 : vector<2x32xf32>
    %276 = arith.mulf %260, %268 : vector<2x32xf32>
    %277 = arith.addf %275, %276 : vector<2x32xf32>
    %278 = math.tanh %277 : vector<2x32xf32>
    %279 = arith.mulf %274, %278 : vector<2x32xf32>
    %c0_114 = arith.constant 0 : index
    %c0_115 = arith.constant 0 : index
    %280 = vector.load %arg9[%c0_114, %c0_115] : memref<2x32xf32, #tpu.memory_space<vmem>>, vector<2x32xf32>
    tpu.vector_store %arg9[%c0_114, %c0_115], %277 {strides = array<i32>} : memref<2x32xf32, #tpu.memory_space<vmem>>, vector<2x32xf32>,
    %c0_116 = arith.constant 0 : index
    %c0_117 = arith.constant 0 : index
    %281 = vector.load %arg8[%c0_116, %c0_117] : memref<2x32xf32, #tpu.memory_space<vmem>>, vector<2x32xf32>
    tpu.vector_store %arg8[%c0_116, %c0_117], %279 {strides = array<i32>} : memref<2x32xf32, #tpu.memory_space<vmem>>, vector<2x32xf32>,
    %282 = arith.index_cast %c6_i32 : i32 to index
    %c0_118 = arith.constant 0 : index
    %c0_119 = arith.constant 0 : index
    %283 = vector.load %arg10[%282, %c0_118, %c0_119] : memref<8x2x32xf32, #tpu.memory_space<vmem>>, vector<1x2x32xf32>
    %284 = vector.shape_cast %283 : vector<1x2x32xf32> to vector<2x32xf32>
    %285 = vector.shape_cast %279 : vector<2x32xf32> to vector<1x2x32xf32>
    tpu.vector_store %arg10[%282, %c0_118, %c0_119], %285 {strides = array<i32>} : memref<8x2x32xf32, #tpu.memory_space<vmem>>, vector<1x2x32xf32>,
    %c7_i32 = arith.constant 7 : i32
    %286 = arith.index_cast %c7_i32 : i32 to index
    %c0_120 = arith.constant 0 : index
    %c0_121 = arith.constant 0 : index
    %287 = vector.load %arg0[%286, %c0_120, %c0_121] : memref<8x2x4xf32, #tpu.memory_space<vmem>>, vector<1x2x4xf32>
    %288 = vector.shape_cast %287 : vector<1x2x4xf32> to vector<2x4xf32>
    %c0_122 = arith.constant 0 : index
    %c0_123 = arith.constant 0 : index
    %289 = vector.load %arg8[%c0_122, %c0_123] : memref<2x32xf32, #tpu.memory_space<vmem>>, vector<2x32xf32>
    %c0_124 = arith.constant 0 : index
    %c0_125 = arith.constant 0 : index
    %290 = vector.load %arg9[%c0_124, %c0_125] : memref<2x32xf32, #tpu.memory_space<vmem>>, vector<2x32xf32>
    %291 = tpu.concatenate %288, %289 in 1 : vector<2x4xf32>, vector<2x32xf32> -> vector<2x36xf32>
    %cst_126 = arith.constant dense<0.000000e+00> : vector<2x128xf32>
    %292 = tpu.matmul %291, %0, %cst_126 {dimension_numbers = #tpu.dot_dimension_numbers<[1], [0], [0], [1], [0, 0, 1, 1], [], []>} : vector<2x36xf32>, vector<36x128xf32>, vector<2x128xf32> -> vector<2x128xf32>
    %293 = vector.broadcast %1 : vector<1x128xf32> to vector<2x128xf32>
    %294 = arith.addf %292, %293 : vector<2x128xf32>
    %295 = vector.extract_strided_slice %294 {offsets = [0, 0], sizes = [2, 32], strides = [1, 1]} : vector<2x128xf32> to vector<2x32xf32>
    %296 = arith.negf %295 : vector<2x32xf32>
    %297 = math.exp %296 : vector<2x32xf32>
    %cst_127 = arith.constant 1.000000e+00 : f32
    %298 = vector.broadcast %cst_127 : f32 to vector<2x32xf32>
    %299 = arith.addf %298, %297 : vector<2x32xf32>
    %300 = arith.divf %298, %299 : vector<2x32xf32>
    %301 = vector.extract_strided_slice %294 {offsets = [0, 32], sizes = [2, 32], strides = [1, 1]} : vector<2x128xf32> to vector<2x32xf32>
    %302 = arith.negf %301 : vector<2x32xf32>
    %303 = math.exp %302 : vector<2x32xf32>
    %cst_128 = arith.constant 1.000000e+00 : f32
    %304 = vector.broadcast %cst_128 : f32 to vector<2x32xf32>
    %305 = arith.addf %304, %303 : vector<2x32xf32>
    %306 = arith.divf %304, %305 : vector<2x32xf32>
    %307 = vector.extract_strided_slice %294 {offsets = [0, 64], sizes = [2, 32], strides = [1, 1]} : vector<2x128xf32> to vector<2x32xf32>
    %308 = math.tanh %307 : vector<2x32xf32>
    %309 = vector.extract_strided_slice %294 {offsets = [0, 96], sizes = [2, 32], strides = [1, 1]} : vector<2x128xf32> to vector<2x32xf32>
    %310 = arith.negf %309 : vector<2x32xf32>
    %311 = math.exp %310 : vector<2x32xf32>
    %cst_129 = arith.constant 1.000000e+00 : f32
    %312 = vector.broadcast %cst_129 : f32 to vector<2x32xf32>
    %313 = arith.addf %312, %311 : vector<2x32xf32>
    %314 = arith.divf %312, %313 : vector<2x32xf32>
    %315 = arith.mulf %306, %290 : vector<2x32xf32>
    %316 = arith.mulf %300, %308 : vector<2x32xf32>
    %317 = arith.addf %315, %316 : vector<2x32xf32>
    %318 = math.tanh %317 : vector<2x32xf32>
    %319 = arith.mulf %314, %318 : vector<2x32xf32>
    %c0_130 = arith.constant 0 : index
    %c0_131 = arith.constant 0 : index
    %320 = vector.load %arg9[%c0_130, %c0_131] : memref<2x32xf32, #tpu.memory_space<vmem>>, vector<2x32xf32>
    tpu.vector_store %arg9[%c0_130, %c0_131], %317 {strides = array<i32>} : memref<2x32xf32, #tpu.memory_space<vmem>>, vector<2x32xf32>,
    %c0_132 = arith.constant 0 : index
    %c0_133 = arith.constant 0 : index
    %321 = vector.load %arg8[%c0_132, %c0_133] : memref<2x32xf32, #tpu.memory_space<vmem>>, vector<2x32xf32>
    tpu.vector_store %arg8[%c0_132, %c0_133], %319 {strides = array<i32>} : memref<2x32xf32, #tpu.memory_space<vmem>>, vector<2x32xf32>,
    %322 = arith.index_cast %c7_i32 : i32 to index
    %c0_134 = arith.constant 0 : index
    %c0_135 = arith.constant 0 : index
    %323 = vector.load %arg10[%322, %c0_134, %c0_135] : memref<8x2x32xf32, #tpu.memory_space<vmem>>, vector<1x2x32xf32>
    %324 = vector.shape_cast %323 : vector<1x2x32xf32> to vector<2x32xf32>
    %325 = vector.shape_cast %319 : vector<2x32xf32> to vector<1x2x32xf32>
    tpu.vector_store %arg10[%322, %c0_134, %c0_135], %325 {strides = array<i32>} : memref<8x2x32xf32, #tpu.memory_space<vmem>>, vector<1x2x32xf32>,
    %c8_i32 = arith.constant 8 : i32
    %c0_136 = arith.constant 0 : index
    %c0_137 = arith.constant 0 : index
    %326 = vector.load %arg3[%c0_136, %c0_137] : memref<64x128xf32, #tpu.memory_space<vmem>>, vector<64x128xf32>
    %c0_138 = arith.constant 0 : index
    %c0_139 = arith.constant 0 : index
    %327 = vector.load %arg4[%c0_138, %c0_139] : memref<1x128xf32, #tpu.memory_space<vmem>>, vector<1x128xf32>
    %cst_140 = arith.constant 0.000000e+00 : f32
    %328 = vector.broadcast %cst_140 : f32 to vector<2x32xf32>
    %c0_141 = arith.constant 0 : index
    %c0_142 = arith.constant 0 : index
    %329 = vector.load %arg8[%c0_141, %c0_142] : memref<2x32xf32, #tpu.memory_space<vmem>>, vector<2x32xf32>
    tpu.vector_store %arg8[%c0_141, %c0_142], %328 {strides = array<i32>} : memref<2x32xf32, #tpu.memory_space<vmem>>, vector<2x32xf32>,
    %cst_143 = arith.constant 0.000000e+00 : f32
    %330 = vector.broadcast %cst_143 : f32 to vector<2x32xf32>
    %c0_144 = arith.constant 0 : index
    %c0_145 = arith.constant 0 : index
    %331 = vector.load %arg9[%c0_144, %c0_145] : memref<2x32xf32, #tpu.memory_space<vmem>>, vector<2x32xf32>
    tpu.vector_store %arg9[%c0_144, %c0_145], %330 {strides = array<i32>} : memref<2x32xf32, #tpu.memory_space<vmem>>, vector<2x32xf32>,
    %c0_i32_146 = arith.constant 0 : i32
    %332 = arith.index_cast %c0_i32_146 : i32 to index
    %c0_147 = arith.constant 0 : index
    %c0_148 = arith.constant 0 : index
    %333 = vector.load %arg10[%332, %c0_147, %c0_148] : memref<8x2x32xf32, #tpu.memory_space<vmem>>, vector<1x2x32xf32>
    %334 = vector.shape_cast %333 : vector<1x2x32xf32> to vector<2x32xf32>
    %c0_149 = arith.constant 0 : index
    %c0_150 = arith.constant 0 : index
    %335 = vector.load %arg8[%c0_149, %c0_150] : memref<2x32xf32, #tpu.memory_space<vmem>>, vector<2x32xf32>
    %c0_151 = arith.constant 0 : index
    %c0_152 = arith.constant 0 : index
    %336 = vector.load %arg9[%c0_151, %c0_152] : memref<2x32xf32, #tpu.memory_space<vmem>>, vector<2x32xf32>
    %337 = tpu.concatenate %334, %335 in 1 : vector<2x32xf32>, vector<2x32xf32> -> vector<2x64xf32>
    %cst_153 = arith.constant dense<0.000000e+00> : vector<2x128xf32>
    %338 = tpu.matmul %337, %326, %cst_153 {dimension_numbers = #tpu.dot_dimension_numbers<[1], [0], [0], [1], [0, 0, 1, 1], [], []>} : vector<2x64xf32>, vector<64x128xf32>, vector<2x128xf32> -> vector<2x128xf32>
    %339 = vector.broadcast %327 : vector<1x128xf32> to vector<2x128xf32>
    %340 = arith.addf %338, %339 : vector<2x128xf32>
    %341 = vector.extract_strided_slice %340 {offsets = [0, 0], sizes = [2, 32], strides = [1, 1]} : vector<2x128xf32> to vector<2x32xf32>
    %342 = arith.negf %341 : vector<2x32xf32>
    %343 = math.exp %342 : vector<2x32xf32>
    %cst_154 = arith.constant 1.000000e+00 : f32
    %344 = vector.broadcast %cst_154 : f32 to vector<2x32xf32>
    %345 = arith.addf %344, %343 : vector<2x32xf32>
    %346 = arith.divf %344, %345 : vector<2x32xf32>
    %347 = vector.extract_strided_slice %340 {offsets = [0, 32], sizes = [2, 32], strides = [1, 1]} : vector<2x128xf32> to vector<2x32xf32>
    %348 = arith.negf %347 : vector<2x32xf32>
    %349 = math.exp %348 : vector<2x32xf32>
    %cst_155 = arith.constant 1.000000e+00 : f32
    %350 = vector.broadcast %cst_155 : f32 to vector<2x32xf32>
    %351 = arith.addf %350, %349 : vector<2x32xf32>
    %352 = arith.divf %350, %351 : vector<2x32xf32>
    %353 = vector.extract_strided_slice %340 {offsets = [0, 64], sizes = [2, 32], strides = [1, 1]} : vector<2x128xf32> to vector<2x32xf32>
    %354 = math.tanh %353 : vector<2x32xf32>
    %355 = vector.extract_strided_slice %340 {offsets = [0, 96], sizes = [2, 32], strides = [1, 1]} : vector<2x128xf32> to vector<2x32xf32>
    %356 = arith.negf %355 : vector<2x32xf32>
    %357 = math.exp %356 : vector<2x32xf32>
    %cst_156 = arith.constant 1.000000e+00 : f32
    %358 = vector.broadcast %cst_156 : f32 to vector<2x32xf32>
    %359 = arith.addf %358, %357 : vector<2x32xf32>
    %360 = arith.divf %358, %359 : vector<2x32xf32>
    %361 = arith.mulf %352, %336 : vector<2x32xf32>
    %362 = arith.mulf %346, %354 : vector<2x32xf32>
    %363 = arith.addf %361, %362 : vector<2x32xf32>
    %364 = math.tanh %363 : vector<2x32xf32>
    %365 = arith.mulf %360, %364 : vector<2x32xf32>
    %c0_157 = arith.constant 0 : index
    %c0_158 = arith.constant 0 : index
    %366 = vector.load %arg9[%c0_157, %c0_158] : memref<2x32xf32, #tpu.memory_space<vmem>>, vector<2x32xf32>
    tpu.vector_store %arg9[%c0_157, %c0_158], %363 {strides = array<i32>} : memref<2x32xf32, #tpu.memory_space<vmem>>, vector<2x32xf32>,
    %c0_159 = arith.constant 0 : index
    %c0_160 = arith.constant 0 : index
    %367 = vector.load %arg8[%c0_159, %c0_160] : memref<2x32xf32, #tpu.memory_space<vmem>>, vector<2x32xf32>
    tpu.vector_store %arg8[%c0_159, %c0_160], %365 {strides = array<i32>} : memref<2x32xf32, #tpu.memory_space<vmem>>, vector<2x32xf32>,
    %c1_i32_161 = arith.constant 1 : i32
    %368 = arith.index_cast %c1_i32_161 : i32 to index
    %c0_162 = arith.constant 0 : index
    %c0_163 = arith.constant 0 : index
    %369 = vector.load %arg10[%368, %c0_162, %c0_163] : memref<8x2x32xf32, #tpu.memory_space<vmem>>, vector<1x2x32xf32>
    %370 = vector.shape_cast %369 : vector<1x2x32xf32> to vector<2x32xf32>
    %c0_164 = arith.constant 0 : index
    %c0_165 = arith.constant 0 : index
    %371 = vector.load %arg8[%c0_164, %c0_165] : memref<2x32xf32, #tpu.memory_space<vmem>>, vector<2x32xf32>
    %c0_166 = arith.constant 0 : index
    %c0_167 = arith.constant 0 : index
    %372 = vector.load %arg9[%c0_166, %c0_167] : memref<2x32xf32, #tpu.memory_space<vmem>>, vector<2x32xf32>
    %373 = tpu.concatenate %370, %371 in 1 : vector<2x32xf32>, vector<2x32xf32> -> vector<2x64xf32>
    %cst_168 = arith.constant dense<0.000000e+00> : vector<2x128xf32>
    %374 = tpu.matmul %373, %326, %cst_168 {dimension_numbers = #tpu.dot_dimension_numbers<[1], [0], [0], [1], [0, 0, 1, 1], [], []>} : vector<2x64xf32>, vector<64x128xf32>, vector<2x128xf32> -> vector<2x128xf32>
    %375 = vector.broadcast %327 : vector<1x128xf32> to vector<2x128xf32>
    %376 = arith.addf %374, %375 : vector<2x128xf32>
    %377 = vector.extract_strided_slice %376 {offsets = [0, 0], sizes = [2, 32], strides = [1, 1]} : vector<2x128xf32> to vector<2x32xf32>
    %378 = arith.negf %377 : vector<2x32xf32>
    %379 = math.exp %378 : vector<2x32xf32>
    %cst_169 = arith.constant 1.000000e+00 : f32
    %380 = vector.broadcast %cst_169 : f32 to vector<2x32xf32>
    %381 = arith.addf %380, %379 : vector<2x32xf32>
    %382 = arith.divf %380, %381 : vector<2x32xf32>
    %383 = vector.extract_strided_slice %376 {offsets = [0, 32], sizes = [2, 32], strides = [1, 1]} : vector<2x128xf32> to vector<2x32xf32>
    %384 = arith.negf %383 : vector<2x32xf32>
    %385 = math.exp %384 : vector<2x32xf32>
    %cst_170 = arith.constant 1.000000e+00 : f32
    %386 = vector.broadcast %cst_170 : f32 to vector<2x32xf32>
    %387 = arith.addf %386, %385 : vector<2x32xf32>
    %388 = arith.divf %386, %387 : vector<2x32xf32>
    %389 = vector.extract_strided_slice %376 {offsets = [0, 64], sizes = [2, 32], strides = [1, 1]} : vector<2x128xf32> to vector<2x32xf32>
    %390 = math.tanh %389 : vector<2x32xf32>
    %391 = vector.extract_strided_slice %376 {offsets = [0, 96], sizes = [2, 32], strides = [1, 1]} : vector<2x128xf32> to vector<2x32xf32>
    %392 = arith.negf %391 : vector<2x32xf32>
    %393 = math.exp %392 : vector<2x32xf32>
    %cst_171 = arith.constant 1.000000e+00 : f32
    %394 = vector.broadcast %cst_171 : f32 to vector<2x32xf32>
    %395 = arith.addf %394, %393 : vector<2x32xf32>
    %396 = arith.divf %394, %395 : vector<2x32xf32>
    %397 = arith.mulf %388, %372 : vector<2x32xf32>
    %398 = arith.mulf %382, %390 : vector<2x32xf32>
    %399 = arith.addf %397, %398 : vector<2x32xf32>
    %400 = math.tanh %399 : vector<2x32xf32>
    %401 = arith.mulf %396, %400 : vector<2x32xf32>
    %c0_172 = arith.constant 0 : index
    %c0_173 = arith.constant 0 : index
    %402 = vector.load %arg9[%c0_172, %c0_173] : memref<2x32xf32, #tpu.memory_space<vmem>>, vector<2x32xf32>
    tpu.vector_store %arg9[%c0_172, %c0_173], %399 {strides = array<i32>} : memref<2x32xf32, #tpu.memory_space<vmem>>, vector<2x32xf32>,
    %c0_174 = arith.constant 0 : index
    %c0_175 = arith.constant 0 : index
    %403 = vector.load %arg8[%c0_174, %c0_175] : memref<2x32xf32, #tpu.memory_space<vmem>>, vector<2x32xf32>
    tpu.vector_store %arg8[%c0_174, %c0_175], %401 {strides = array<i32>} : memref<2x32xf32, #tpu.memory_space<vmem>>, vector<2x32xf32>,
    %c2_i32_176 = arith.constant 2 : i32
    %404 = arith.index_cast %c2_i32_176 : i32 to index
    %c0_177 = arith.constant 0 : index
    %c0_178 = arith.constant 0 : index
    %405 = vector.load %arg10[%404, %c0_177, %c0_178] : memref<8x2x32xf32, #tpu.memory_space<vmem>>, vector<1x2x32xf32>
    %406 = vector.shape_cast %405 : vector<1x2x32xf32> to vector<2x32xf32>
    %c0_179 = arith.constant 0 : index
    %c0_180 = arith.constant 0 : index
    %407 = vector.load %arg8[%c0_179, %c0_180] : memref<2x32xf32, #tpu.memory_space<vmem>>, vector<2x32xf32>
    %c0_181 = arith.constant 0 : index
    %c0_182 = arith.constant 0 : index
    %408 = vector.load %arg9[%c0_181, %c0_182] : memref<2x32xf32, #tpu.memory_space<vmem>>, vector<2x32xf32>
    %409 = tpu.concatenate %406, %407 in 1 : vector<2x32xf32>, vector<2x32xf32> -> vector<2x64xf32>
    %cst_183 = arith.constant dense<0.000000e+00> : vector<2x128xf32>
    %410 = tpu.matmul %409, %326, %cst_183 {dimension_numbers = #tpu.dot_dimension_numbers<[1], [0], [0], [1], [0, 0, 1, 1], [], []>} : vector<2x64xf32>, vector<64x128xf32>, vector<2x128xf32> -> vector<2x128xf32>
    %411 = vector.broadcast %327 : vector<1x128xf32> to vector<2x128xf32>
    %412 = arith.addf %410, %411 : vector<2x128xf32>
    %413 = vector.extract_strided_slice %412 {offsets = [0, 0], sizes = [2, 32], strides = [1, 1]} : vector<2x128xf32> to vector<2x32xf32>
    %414 = arith.negf %413 : vector<2x32xf32>
    %415 = math.exp %414 : vector<2x32xf32>
    %cst_184 = arith.constant 1.000000e+00 : f32
    %416 = vector.broadcast %cst_184 : f32 to vector<2x32xf32>
    %417 = arith.addf %416, %415 : vector<2x32xf32>
    %418 = arith.divf %416, %417 : vector<2x32xf32>
    %419 = vector.extract_strided_slice %412 {offsets = [0, 32], sizes = [2, 32], strides = [1, 1]} : vector<2x128xf32> to vector<2x32xf32>
    %420 = arith.negf %419 : vector<2x32xf32>
    %421 = math.exp %420 : vector<2x32xf32>
    %cst_185 = arith.constant 1.000000e+00 : f32
    %422 = vector.broadcast %cst_185 : f32 to vector<2x32xf32>
    %423 = arith.addf %422, %421 : vector<2x32xf32>
    %424 = arith.divf %422, %423 : vector<2x32xf32>
    %425 = vector.extract_strided_slice %412 {offsets = [0, 64], sizes = [2, 32], strides = [1, 1]} : vector<2x128xf32> to vector<2x32xf32>
    %426 = math.tanh %425 : vector<2x32xf32>
    %427 = vector.extract_strided_slice %412 {offsets = [0, 96], sizes = [2, 32], strides = [1, 1]} : vector<2x128xf32> to vector<2x32xf32>
    %428 = arith.negf %427 : vector<2x32xf32>
    %429 = math.exp %428 : vector<2x32xf32>
    %cst_186 = arith.constant 1.000000e+00 : f32
    %430 = vector.broadcast %cst_186 : f32 to vector<2x32xf32>
    %431 = arith.addf %430, %429 : vector<2x32xf32>
    %432 = arith.divf %430, %431 : vector<2x32xf32>
    %433 = arith.mulf %424, %408 : vector<2x32xf32>
    %434 = arith.mulf %418, %426 : vector<2x32xf32>
    %435 = arith.addf %433, %434 : vector<2x32xf32>
    %436 = math.tanh %435 : vector<2x32xf32>
    %437 = arith.mulf %432, %436 : vector<2x32xf32>
    %c0_187 = arith.constant 0 : index
    %c0_188 = arith.constant 0 : index
    %438 = vector.load %arg9[%c0_187, %c0_188] : memref<2x32xf32, #tpu.memory_space<vmem>>, vector<2x32xf32>
    tpu.vector_store %arg9[%c0_187, %c0_188], %435 {strides = array<i32>} : memref<2x32xf32, #tpu.memory_space<vmem>>, vector<2x32xf32>,
    %c0_189 = arith.constant 0 : index
    %c0_190 = arith.constant 0 : index
    %439 = vector.load %arg8[%c0_189, %c0_190] : memref<2x32xf32, #tpu.memory_space<vmem>>, vector<2x32xf32>
    tpu.vector_store %arg8[%c0_189, %c0_190], %437 {strides = array<i32>} : memref<2x32xf32, #tpu.memory_space<vmem>>, vector<2x32xf32>,
    %c3_i32_191 = arith.constant 3 : i32
    %440 = arith.index_cast %c3_i32_191 : i32 to index
    %c0_192 = arith.constant 0 : index
    %c0_193 = arith.constant 0 : index
    %441 = vector.load %arg10[%440, %c0_192, %c0_193] : memref<8x2x32xf32, #tpu.memory_space<vmem>>, vector<1x2x32xf32>
    %442 = vector.shape_cast %441 : vector<1x2x32xf32> to vector<2x32xf32>
    %c0_194 = arith.constant 0 : index
    %c0_195 = arith.constant 0 : index
    %443 = vector.load %arg8[%c0_194, %c0_195] : memref<2x32xf32, #tpu.memory_space<vmem>>, vector<2x32xf32>
    %c0_196 = arith.constant 0 : index
    %c0_197 = arith.constant 0 : index
    %444 = vector.load %arg9[%c0_196, %c0_197] : memref<2x32xf32, #tpu.memory_space<vmem>>, vector<2x32xf32>
    %445 = tpu.concatenate %442, %443 in 1 : vector<2x32xf32>, vector<2x32xf32> -> vector<2x64xf32>
    %cst_198 = arith.constant dense<0.000000e+00> : vector<2x128xf32>
    %446 = tpu.matmul %445, %326, %cst_198 {dimension_numbers = #tpu.dot_dimension_numbers<[1], [0], [0], [1], [0, 0, 1, 1], [], []>} : vector<2x64xf32>, vector<64x128xf32>, vector<2x128xf32> -> vector<2x128xf32>
    %447 = vector.broadcast %327 : vector<1x128xf32> to vector<2x128xf32>
    %448 = arith.addf %446, %447 : vector<2x128xf32>
    %449 = vector.extract_strided_slice %448 {offsets = [0, 0], sizes = [2, 32], strides = [1, 1]} : vector<2x128xf32> to vector<2x32xf32>
    %450 = arith.negf %449 : vector<2x32xf32>
    %451 = math.exp %450 : vector<2x32xf32>
    %cst_199 = arith.constant 1.000000e+00 : f32
    %452 = vector.broadcast %cst_199 : f32 to vector<2x32xf32>
    %453 = arith.addf %452, %451 : vector<2x32xf32>
    %454 = arith.divf %452, %453 : vector<2x32xf32>
    %455 = vector.extract_strided_slice %448 {offsets = [0, 32], sizes = [2, 32], strides = [1, 1]} : vector<2x128xf32> to vector<2x32xf32>
    %456 = arith.negf %455 : vector<2x32xf32>
    %457 = math.exp %456 : vector<2x32xf32>
    %cst_200 = arith.constant 1.000000e+00 : f32
    %458 = vector.broadcast %cst_200 : f32 to vector<2x32xf32>
    %459 = arith.addf %458, %457 : vector<2x32xf32>
    %460 = arith.divf %458, %459 : vector<2x32xf32>
    %461 = vector.extract_strided_slice %448 {offsets = [0, 64], sizes = [2, 32], strides = [1, 1]} : vector<2x128xf32> to vector<2x32xf32>
    %462 = math.tanh %461 : vector<2x32xf32>
    %463 = vector.extract_strided_slice %448 {offsets = [0, 96], sizes = [2, 32], strides = [1, 1]} : vector<2x128xf32> to vector<2x32xf32>
    %464 = arith.negf %463 : vector<2x32xf32>
    %465 = math.exp %464 : vector<2x32xf32>
    %cst_201 = arith.constant 1.000000e+00 : f32
    %466 = vector.broadcast %cst_201 : f32 to vector<2x32xf32>
    %467 = arith.addf %466, %465 : vector<2x32xf32>
    %468 = arith.divf %466, %467 : vector<2x32xf32>
    %469 = arith.mulf %460, %444 : vector<2x32xf32>
    %470 = arith.mulf %454, %462 : vector<2x32xf32>
    %471 = arith.addf %469, %470 : vector<2x32xf32>
    %472 = math.tanh %471 : vector<2x32xf32>
    %473 = arith.mulf %468, %472 : vector<2x32xf32>
    %c0_202 = arith.constant 0 : index
    %c0_203 = arith.constant 0 : index
    %474 = vector.load %arg9[%c0_202, %c0_203] : memref<2x32xf32, #tpu.memory_space<vmem>>, vector<2x32xf32>
    tpu.vector_store %arg9[%c0_202, %c0_203], %471 {strides = array<i32>} : memref<2x32xf32, #tpu.memory_space<vmem>>, vector<2x32xf32>,
    %c0_204 = arith.constant 0 : index
    %c0_205 = arith.constant 0 : index
    %475 = vector.load %arg8[%c0_204, %c0_205] : memref<2x32xf32, #tpu.memory_space<vmem>>, vector<2x32xf32>
    tpu.vector_store %arg8[%c0_204, %c0_205], %473 {strides = array<i32>} : memref<2x32xf32, #tpu.memory_space<vmem>>, vector<2x32xf32>,
    %c4_i32_206 = arith.constant 4 : i32
    %476 = arith.index_cast %c4_i32_206 : i32 to index
    %c0_207 = arith.constant 0 : index
    %c0_208 = arith.constant 0 : index
    %477 = vector.load %arg10[%476, %c0_207, %c0_208] : memref<8x2x32xf32, #tpu.memory_space<vmem>>, vector<1x2x32xf32>
    %478 = vector.shape_cast %477 : vector<1x2x32xf32> to vector<2x32xf32>
    %c0_209 = arith.constant 0 : index
    %c0_210 = arith.constant 0 : index
    %479 = vector.load %arg8[%c0_209, %c0_210] : memref<2x32xf32, #tpu.memory_space<vmem>>, vector<2x32xf32>
    %c0_211 = arith.constant 0 : index
    %c0_212 = arith.constant 0 : index
    %480 = vector.load %arg9[%c0_211, %c0_212] : memref<2x32xf32, #tpu.memory_space<vmem>>, vector<2x32xf32>
    %481 = tpu.concatenate %478, %479 in 1 : vector<2x32xf32>, vector<2x32xf32> -> vector<2x64xf32>
    %cst_213 = arith.constant dense<0.000000e+00> : vector<2x128xf32>
    %482 = tpu.matmul %481, %326, %cst_213 {dimension_numbers = #tpu.dot_dimension_numbers<[1], [0], [0], [1], [0, 0, 1, 1], [], []>} : vector<2x64xf32>, vector<64x128xf32>, vector<2x128xf32> -> vector<2x128xf32>
    %483 = vector.broadcast %327 : vector<1x128xf32> to vector<2x128xf32>
    %484 = arith.addf %482, %483 : vector<2x128xf32>
    %485 = vector.extract_strided_slice %484 {offsets = [0, 0], sizes = [2, 32], strides = [1, 1]} : vector<2x128xf32> to vector<2x32xf32>
    %486 = arith.negf %485 : vector<2x32xf32>
    %487 = math.exp %486 : vector<2x32xf32>
    %cst_214 = arith.constant 1.000000e+00 : f32
    %488 = vector.broadcast %cst_214 : f32 to vector<2x32xf32>
    %489 = arith.addf %488, %487 : vector<2x32xf32>
    %490 = arith.divf %488, %489 : vector<2x32xf32>
    %491 = vector.extract_strided_slice %484 {offsets = [0, 32], sizes = [2, 32], strides = [1, 1]} : vector<2x128xf32> to vector<2x32xf32>
    %492 = arith.negf %491 : vector<2x32xf32>
    %493 = math.exp %492 : vector<2x32xf32>
    %cst_215 = arith.constant 1.000000e+00 : f32
    %494 = vector.broadcast %cst_215 : f32 to vector<2x32xf32>
    %495 = arith.addf %494, %493 : vector<2x32xf32>
    %496 = arith.divf %494, %495 : vector<2x32xf32>
    %497 = vector.extract_strided_slice %484 {offsets = [0, 64], sizes = [2, 32], strides = [1, 1]} : vector<2x128xf32> to vector<2x32xf32>
    %498 = math.tanh %497 : vector<2x32xf32>
    %499 = vector.extract_strided_slice %484 {offsets = [0, 96], sizes = [2, 32], strides = [1, 1]} : vector<2x128xf32> to vector<2x32xf32>
    %500 = arith.negf %499 : vector<2x32xf32>
    %501 = math.exp %500 : vector<2x32xf32>
    %cst_216 = arith.constant 1.000000e+00 : f32
    %502 = vector.broadcast %cst_216 : f32 to vector<2x32xf32>
    %503 = arith.addf %502, %501 : vector<2x32xf32>
    %504 = arith.divf %502, %503 : vector<2x32xf32>
    %505 = arith.mulf %496, %480 : vector<2x32xf32>
    %506 = arith.mulf %490, %498 : vector<2x32xf32>
    %507 = arith.addf %505, %506 : vector<2x32xf32>
    %508 = math.tanh %507 : vector<2x32xf32>
    %509 = arith.mulf %504, %508 : vector<2x32xf32>
    %c0_217 = arith.constant 0 : index
    %c0_218 = arith.constant 0 : index
    %510 = vector.load %arg9[%c0_217, %c0_218] : memref<2x32xf32, #tpu.memory_space<vmem>>, vector<2x32xf32>
    tpu.vector_store %arg9[%c0_217, %c0_218], %507 {strides = array<i32>} : memref<2x32xf32, #tpu.memory_space<vmem>>, vector<2x32xf32>,
    %c0_219 = arith.constant 0 : index
    %c0_220 = arith.constant 0 : index
    %511 = vector.load %arg8[%c0_219, %c0_220] : memref<2x32xf32, #tpu.memory_space<vmem>>, vector<2x32xf32>
    tpu.vector_store %arg8[%c0_219, %c0_220], %509 {strides = array<i32>} : memref<2x32xf32, #tpu.memory_space<vmem>>, vector<2x32xf32>,
    %c5_i32_221 = arith.constant 5 : i32
    %512 = arith.index_cast %c5_i32_221 : i32 to index
    %c0_222 = arith.constant 0 : index
    %c0_223 = arith.constant 0 : index
    %513 = vector.load %arg10[%512, %c0_222, %c0_223] : memref<8x2x32xf32, #tpu.memory_space<vmem>>, vector<1x2x32xf32>
    %514 = vector.shape_cast %513 : vector<1x2x32xf32> to vector<2x32xf32>
    %c0_224 = arith.constant 0 : index
    %c0_225 = arith.constant 0 : index
    %515 = vector.load %arg8[%c0_224, %c0_225] : memref<2x32xf32, #tpu.memory_space<vmem>>, vector<2x32xf32>
    %c0_226 = arith.constant 0 : index
    %c0_227 = arith.constant 0 : index
    %516 = vector.load %arg9[%c0_226, %c0_227] : memref<2x32xf32, #tpu.memory_space<vmem>>, vector<2x32xf32>
    %517 = tpu.concatenate %514, %515 in 1 : vector<2x32xf32>, vector<2x32xf32> -> vector<2x64xf32>
    %cst_228 = arith.constant dense<0.000000e+00> : vector<2x128xf32>
    %518 = tpu.matmul %517, %326, %cst_228 {dimension_numbers = #tpu.dot_dimension_numbers<[1], [0], [0], [1], [0, 0, 1, 1], [], []>} : vector<2x64xf32>, vector<64x128xf32>, vector<2x128xf32> -> vector<2x128xf32>
    %519 = vector.broadcast %327 : vector<1x128xf32> to vector<2x128xf32>
    %520 = arith.addf %518, %519 : vector<2x128xf32>
    %521 = vector.extract_strided_slice %520 {offsets = [0, 0], sizes = [2, 32], strides = [1, 1]} : vector<2x128xf32> to vector<2x32xf32>
    %522 = arith.negf %521 : vector<2x32xf32>
    %523 = math.exp %522 : vector<2x32xf32>
    %cst_229 = arith.constant 1.000000e+00 : f32
    %524 = vector.broadcast %cst_229 : f32 to vector<2x32xf32>
    %525 = arith.addf %524, %523 : vector<2x32xf32>
    %526 = arith.divf %524, %525 : vector<2x32xf32>
    %527 = vector.extract_strided_slice %520 {offsets = [0, 32], sizes = [2, 32], strides = [1, 1]} : vector<2x128xf32> to vector<2x32xf32>
    %528 = arith.negf %527 : vector<2x32xf32>
    %529 = math.exp %528 : vector<2x32xf32>
    %cst_230 = arith.constant 1.000000e+00 : f32
    %530 = vector.broadcast %cst_230 : f32 to vector<2x32xf32>
    %531 = arith.addf %530, %529 : vector<2x32xf32>
    %532 = arith.divf %530, %531 : vector<2x32xf32>
    %533 = vector.extract_strided_slice %520 {offsets = [0, 64], sizes = [2, 32], strides = [1, 1]} : vector<2x128xf32> to vector<2x32xf32>
    %534 = math.tanh %533 : vector<2x32xf32>
    %535 = vector.extract_strided_slice %520 {offsets = [0, 96], sizes = [2, 32], strides = [1, 1]} : vector<2x128xf32> to vector<2x32xf32>
    %536 = arith.negf %535 : vector<2x32xf32>
    %537 = math.exp %536 : vector<2x32xf32>
    %cst_231 = arith.constant 1.000000e+00 : f32
    %538 = vector.broadcast %cst_231 : f32 to vector<2x32xf32>
    %539 = arith.addf %538, %537 : vector<2x32xf32>
    %540 = arith.divf %538, %539 : vector<2x32xf32>
    %541 = arith.mulf %532, %516 : vector<2x32xf32>
    %542 = arith.mulf %526, %534 : vector<2x32xf32>
    %543 = arith.addf %541, %542 : vector<2x32xf32>
    %544 = math.tanh %543 : vector<2x32xf32>
    %545 = arith.mulf %540, %544 : vector<2x32xf32>
    %c0_232 = arith.constant 0 : index
    %c0_233 = arith.constant 0 : index
    %546 = vector.load %arg9[%c0_232, %c0_233] : memref<2x32xf32, #tpu.memory_space<vmem>>, vector<2x32xf32>
    tpu.vector_store %arg9[%c0_232, %c0_233], %543 {strides = array<i32>} : memref<2x32xf32, #tpu.memory_space<vmem>>, vector<2x32xf32>,
    %c0_234 = arith.constant 0 : index
    %c0_235 = arith.constant 0 : index
    %547 = vector.load %arg8[%c0_234, %c0_235] : memref<2x32xf32, #tpu.memory_space<vmem>>, vector<2x32xf32>
    tpu.vector_store %arg8[%c0_234, %c0_235], %545 {strides = array<i32>} : memref<2x32xf32, #tpu.memory_space<vmem>>, vector<2x32xf32>,
    %c6_i32_236 = arith.constant 6 : i32
    %548 = arith.index_cast %c6_i32_236 : i32 to index
    %c0_237 = arith.constant 0 : index
    %c0_238 = arith.constant 0 : index
    %549 = vector.load %arg10[%548, %c0_237, %c0_238] : memref<8x2x32xf32, #tpu.memory_space<vmem>>, vector<1x2x32xf32>
    %550 = vector.shape_cast %549 : vector<1x2x32xf32> to vector<2x32xf32>
    %c0_239 = arith.constant 0 : index
    %c0_240 = arith.constant 0 : index
    %551 = vector.load %arg8[%c0_239, %c0_240] : memref<2x32xf32, #tpu.memory_space<vmem>>, vector<2x32xf32>
    %c0_241 = arith.constant 0 : index
    %c0_242 = arith.constant 0 : index
    %552 = vector.load %arg9[%c0_241, %c0_242] : memref<2x32xf32, #tpu.memory_space<vmem>>, vector<2x32xf32>
    %553 = tpu.concatenate %550, %551 in 1 : vector<2x32xf32>, vector<2x32xf32> -> vector<2x64xf32>
    %cst_243 = arith.constant dense<0.000000e+00> : vector<2x128xf32>
    %554 = tpu.matmul %553, %326, %cst_243 {dimension_numbers = #tpu.dot_dimension_numbers<[1], [0], [0], [1], [0, 0, 1, 1], [], []>} : vector<2x64xf32>, vector<64x128xf32>, vector<2x128xf32> -> vector<2x128xf32>
    %555 = vector.broadcast %327 : vector<1x128xf32> to vector<2x128xf32>
    %556 = arith.addf %554, %555 : vector<2x128xf32>
    %557 = vector.extract_strided_slice %556 {offsets = [0, 0], sizes = [2, 32], strides = [1, 1]} : vector<2x128xf32> to vector<2x32xf32>
    %558 = arith.negf %557 : vector<2x32xf32>
    %559 = math.exp %558 : vector<2x32xf32>
    %cst_244 = arith.constant 1.000000e+00 : f32
    %560 = vector.broadcast %cst_244 : f32 to vector<2x32xf32>
    %561 = arith.addf %560, %559 : vector<2x32xf32>
    %562 = arith.divf %560, %561 : vector<2x32xf32>
    %563 = vector.extract_strided_slice %556 {offsets = [0, 32], sizes = [2, 32], strides = [1, 1]} : vector<2x128xf32> to vector<2x32xf32>
    %564 = arith.negf %563 : vector<2x32xf32>
    %565 = math.exp %564 : vector<2x32xf32>
    %cst_245 = arith.constant 1.000000e+00 : f32
    %566 = vector.broadcast %cst_245 : f32 to vector<2x32xf32>
    %567 = arith.addf %566, %565 : vector<2x32xf32>
    %568 = arith.divf %566, %567 : vector<2x32xf32>
    %569 = vector.extract_strided_slice %556 {offsets = [0, 64], sizes = [2, 32], strides = [1, 1]} : vector<2x128xf32> to vector<2x32xf32>
    %570 = math.tanh %569 : vector<2x32xf32>
    %571 = vector.extract_strided_slice %556 {offsets = [0, 96], sizes = [2, 32], strides = [1, 1]} : vector<2x128xf32> to vector<2x32xf32>
    %572 = arith.negf %571 : vector<2x32xf32>
    %573 = math.exp %572 : vector<2x32xf32>
    %cst_246 = arith.constant 1.000000e+00 : f32
    %574 = vector.broadcast %cst_246 : f32 to vector<2x32xf32>
    %575 = arith.addf %574, %573 : vector<2x32xf32>
    %576 = arith.divf %574, %575 : vector<2x32xf32>
    %577 = arith.mulf %568, %552 : vector<2x32xf32>
    %578 = arith.mulf %562, %570 : vector<2x32xf32>
    %579 = arith.addf %577, %578 : vector<2x32xf32>
    %580 = math.tanh %579 : vector<2x32xf32>
    %581 = arith.mulf %576, %580 : vector<2x32xf32>
    %c0_247 = arith.constant 0 : index
    %c0_248 = arith.constant 0 : index
    %582 = vector.load %arg9[%c0_247, %c0_248] : memref<2x32xf32, #tpu.memory_space<vmem>>, vector<2x32xf32>
    tpu.vector_store %arg9[%c0_247, %c0_248], %579 {strides = array<i32>} : memref<2x32xf32, #tpu.memory_space<vmem>>, vector<2x32xf32>,
    %c0_249 = arith.constant 0 : index
    %c0_250 = arith.constant 0 : index
    %583 = vector.load %arg8[%c0_249, %c0_250] : memref<2x32xf32, #tpu.memory_space<vmem>>, vector<2x32xf32>
    tpu.vector_store %arg8[%c0_249, %c0_250], %581 {strides = array<i32>} : memref<2x32xf32, #tpu.memory_space<vmem>>, vector<2x32xf32>,
    %c7_i32_251 = arith.constant 7 : i32
    %584 = arith.index_cast %c7_i32_251 : i32 to index
    %c0_252 = arith.constant 0 : index
    %c0_253 = arith.constant 0 : index
    %585 = vector.load %arg10[%584, %c0_252, %c0_253] : memref<8x2x32xf32, #tpu.memory_space<vmem>>, vector<1x2x32xf32>
    %586 = vector.shape_cast %585 : vector<1x2x32xf32> to vector<2x32xf32>
    %c0_254 = arith.constant 0 : index
    %c0_255 = arith.constant 0 : index
    %587 = vector.load %arg8[%c0_254, %c0_255] : memref<2x32xf32, #tpu.memory_space<vmem>>, vector<2x32xf32>
    %c0_256 = arith.constant 0 : index
    %c0_257 = arith.constant 0 : index
    %588 = vector.load %arg9[%c0_256, %c0_257] : memref<2x32xf32, #tpu.memory_space<vmem>>, vector<2x32xf32>
    %589 = tpu.concatenate %586, %587 in 1 : vector<2x32xf32>, vector<2x32xf32> -> vector<2x64xf32>
    %cst_258 = arith.constant dense<0.000000e+00> : vector<2x128xf32>
    %590 = tpu.matmul %589, %326, %cst_258 {dimension_numbers = #tpu.dot_dimension_numbers<[1], [0], [0], [1], [0, 0, 1, 1], [], []>} : vector<2x64xf32>, vector<64x128xf32>, vector<2x128xf32> -> vector<2x128xf32>
    %591 = vector.broadcast %327 : vector<1x128xf32> to vector<2x128xf32>
    %592 = arith.addf %590, %591 : vector<2x128xf32>
    %593 = vector.extract_strided_slice %592 {offsets = [0, 0], sizes = [2, 32], strides = [1, 1]} : vector<2x128xf32> to vector<2x32xf32>
    %594 = arith.negf %593 : vector<2x32xf32>
    %595 = math.exp %594 : vector<2x32xf32>
    %cst_259 = arith.constant 1.000000e+00 : f32
    %596 = vector.broadcast %cst_259 : f32 to vector<2x32xf32>
    %597 = arith.addf %596, %595 : vector<2x32xf32>
    %598 = arith.divf %596, %597 : vector<2x32xf32>
    %599 = vector.extract_strided_slice %592 {offsets = [0, 32], sizes = [2, 32], strides = [1, 1]} : vector<2x128xf32> to vector<2x32xf32>
    %600 = arith.negf %599 : vector<2x32xf32>
    %601 = math.exp %600 : vector<2x32xf32>
    %cst_260 = arith.constant 1.000000e+00 : f32
    %602 = vector.broadcast %cst_260 : f32 to vector<2x32xf32>
    %603 = arith.addf %602, %601 : vector<2x32xf32>
    %604 = arith.divf %602, %603 : vector<2x32xf32>
    %605 = vector.extract_strided_slice %592 {offsets = [0, 64], sizes = [2, 32], strides = [1, 1]} : vector<2x128xf32> to vector<2x32xf32>
    %606 = math.tanh %605 : vector<2x32xf32>
    %607 = vector.extract_strided_slice %592 {offsets = [0, 96], sizes = [2, 32], strides = [1, 1]} : vector<2x128xf32> to vector<2x32xf32>
    %608 = arith.negf %607 : vector<2x32xf32>
    %609 = math.exp %608 : vector<2x32xf32>
    %cst_261 = arith.constant 1.000000e+00 : f32
    %610 = vector.broadcast %cst_261 : f32 to vector<2x32xf32>
    %611 = arith.addf %610, %609 : vector<2x32xf32>
    %612 = arith.divf %610, %611 : vector<2x32xf32>
    %613 = arith.mulf %604, %588 : vector<2x32xf32>
    %614 = arith.mulf %598, %606 : vector<2x32xf32>
    %615 = arith.addf %613, %614 : vector<2x32xf32>
    %616 = math.tanh %615 : vector<2x32xf32>
    %617 = arith.mulf %612, %616 : vector<2x32xf32>
    %c0_262 = arith.constant 0 : index
    %c0_263 = arith.constant 0 : index
    %618 = vector.load %arg9[%c0_262, %c0_263] : memref<2x32xf32, #tpu.memory_space<vmem>>, vector<2x32xf32>
    tpu.vector_store %arg9[%c0_262, %c0_263], %615 {strides = array<i32>} : memref<2x32xf32, #tpu.memory_space<vmem>>, vector<2x32xf32>,
    %c0_264 = arith.constant 0 : index
    %c0_265 = arith.constant 0 : index
    %619 = vector.load %arg8[%c0_264, %c0_265] : memref<2x32xf32, #tpu.memory_space<vmem>>, vector<2x32xf32>
    tpu.vector_store %arg8[%c0_264, %c0_265], %617 {strides = array<i32>} : memref<2x32xf32, #tpu.memory_space<vmem>>, vector<2x32xf32>,
    %c8_i32_266 = arith.constant 8 : i32
    %c0_267 = arith.constant 0 : index
    %c0_268 = arith.constant 0 : index
    %620 = vector.load %arg8[%c0_267, %c0_268] : memref<2x32xf32, #tpu.memory_space<vmem>>, vector<2x32xf32>
    %c0_269 = arith.constant 0 : index
    %c0_270 = arith.constant 0 : index
    %621 = vector.load %arg5[%c0_269, %c0_270] : memref<32x3xf32, #tpu.memory_space<vmem>>, vector<32x3xf32>
    %cst_271 = arith.constant dense<0.000000e+00> : vector<2x3xf32>
    %622 = tpu.matmul %620, %621, %cst_271 {dimension_numbers = #tpu.dot_dimension_numbers<[1], [0], [0], [1], [0, 0, 1, 1], [], []>} : vector<2x32xf32>, vector<32x3xf32>, vector<2x3xf32> -> vector<2x3xf32>
    %c0_272 = arith.constant 0 : index
    %c0_273 = arith.constant 0 : index
    %623 = vector.load %arg6[%c0_272, %c0_273] : memref<1x3xf32, #tpu.memory_space<vmem>>, vector<1x3xf32>
    %624 = vector.broadcast %623 : vector<1x3xf32> to vector<2x3xf32>
    %625 = arith.addf %622, %624 : vector<2x3xf32>
    %c0_274 = arith.constant 0 : index
    %c0_275 = arith.constant 0 : index
    %626 = vector.load %arg7[%c0_274, %c0_275] : memref<2x3xf32, #tpu.memory_space<vmem>>, vector<2x3xf32>
    tpu.vector_store %arg7[%c0_274, %c0_275], %625 {strides = array<i32>} : memref<2x3xf32, #tpu.memory_space<vmem>>, vector<2x3xf32>,
    return
  }
}

</mosaic_0001>

<bundles_post_ra>
// kernel: lstm_model_forward.1
= control target key start
LH: loop header
LB: loop body
LE: loop exit
PB: predicated region body
PF: predicated region fallthrough
CT: control target
= control target key end

     0   :  { %12 = vsyncpa [#allocation6], 0  ;;  %s3352_s0 = inlined_call_operand.vmem [shape: f32[8,2,4], index: 0, kind: input, shape index: {}]   ;;  %s3353_s1 = inlined_call_operand.hbm [shape: f32[36,128], index: 1, kind: input, shape index: {}]   ;;  %s3354_s2 = inlined_call_operand.vmem [shape: f32[1,128], index: 2, kind: input, shape index: {}]   ;;  %s3355_s3 = inlined_call_operand.vmem [shape: f32[64,128], index: 3, kind: input, shape index: {}]   ;;  %s3356_s4 = inlined_call_operand.vmem [shape: f32[1,128], index: 4, kind: input, shape index: {}]   ;;  %s3357_s5 = inlined_call_operand.vmem [shape: f32[32,3], index: 5, kind: input, shape index: {}]   ;;  %s3358_s6 = inlined_call_operand.vmem [shape: f32[1,3], index: 6, kind: input, shape index: {}]   ;;  %s3359_s7 = inlined_call_operand.hbm [shape: f32[2,3], index: 7, kind: output, shape index: {}]  }
   0x1   :  { %13 = vsyncpa [#allocation7], 0  ;;  %s2734_s24 = smov [#allocation5]  }
   0x2   :  { %s21_s25 = sshll.u32 %s2734_s24, 4  ;;  %s22_s25 = int_to_ptr.vmem [resolvable:$true] %s21_s25 }
   0x3   :  { %s2698_s26 = scalar_lea.vmem %s22_s25, 640  ;;  %p2703_p1 = scmp.lt.s32.totalorder %s22_s25, %s22_s25 }
   0x4   :  { %p2699_p0 = scmp.ne.s32.totalorder %s22_s25, %s2698_s26  ;;  %p2704_p2 = scmp.lt.s32.totalorder %s2698_s26, %s2698_s26 }
   0x6   :  { %p2705_p3 = por %p2704_p2, %p2703_p1 }
   0x8   :  { %p2706_p4 = pnand %p2705_p3, %p2699_p0 }
   0xa   :  { %2709 = shalt.err (!%p2706_p4)
}
   0xb   :  { %s2735_s27 = smov 128   ;;  %s2736_s28 = smov 8  }
   0xc   :  { %27 = dma.hbm_to_vmem [thread:$0]  %s3353_s1, 640, %s22_s25, [#allocation6], %s2735_s27, %s2735_s27, %s2736_s28  }
   0xd   :  { %2730 = dma.done.wait [#allocation6], 640  }
   0xe   :  { %2731 = vsyncadd [#allocation6], 4294966656  ;;  %vm47_vm0 = vcmask 254976   ;;  %v2737_v0 = vmov 0.0   ;;  %vm2738_vm1 = vmmov 0   ;;  %vm69_vm2 = vcmask 1043456  }
   0xf   :  { %48 = vst.msk [vmem:[#allocation2] sm:$0x3] %vm47_vm0, %v2737_v0  ;;  %49 = vst.msk [vmem:[#allocation3] sm:$0x3] %vm47_vm0, %v2737_v0  ;;  %2285 = vmatprep.subr.mxu0 %v2737_v0  ;;  %2298 = vmatprep.subr.mxu1 %v2737_v0  ;;  %v2797_v1 = vld [vmem:[#allocation5 + $0x20] sm:$0xf] }
  0x10   :  { %2295 = vmatprep.mubr.msk.f32.mxu0 %vm2738_vm1, %v2737_v0  ;;  %2308 = vmatprep.mubr.msk.f32.mxu1 %vm2738_vm1, %v2737_v0  ;;  %v2799_v2 = vld [vmem:[#allocation5 + $0x18] sm:$0xff]  ;;  %s2739_s1 = smov 4   ;;  %v2807_v4 = vld [vmem:[#allocation5 + $0x10] sm:$0xff]  ;;  %s2740_s8 = smov 32   ;;  %v2812_v6 = vld [vmem:[#allocation5 + $0x8] sm:$0xff]  ;;  %vm57_vm3 = vcmask 31744  }
  0x11   :  { %2286 = vmatpush3.msk.msra.mxu0 %vm69_vm2, %v2797_v1  ;;  %2299 = vmatpush3.msk.msra.mxu1 %vm69_vm2, %v2797_v1  ;;  %v2818_v7 = vld [vmem:[#allocation5] sm:$0xff]  ;;  %v50_v8 = vld [vmem:[%s3352_s0] sm:$0x3]  ;;  %vm65_vm4 = vcmask 293888   ;;  %s2741_s13 = smov 64   ;;  %vm1054_vm5 = vcmask 261120  }
  0x12   :  { %2287 = vmatprep.subr.mxu0 %v2737_v0  ;;  %2300 = vmatprep.subr.mxu1 %v2737_v0  ;;  %v2852_v11 = vld [vmem:[%s3354_s2] ss:$0 sm:$0xff]  ;;  %s2742_s2 = smov 96   ;;  %v2113_v33 = vld [vmem:[%s3352_s0 + $0x2] sm:$0x3]  ;;  %vm1062_vm6 = vcmask 523264  }
  0x13   :  { %2288 = vmatpush3.msra.mxu0 %v2799_v2  ;;  %2301 = vmatpush3.msra.mxu1 %v2799_v2  ;;  %v2117_v57 = vld [vmem:[%s3352_s0 + $0x4] sm:$0x3]  ;;  %vm2092_vm7 = vcmask 17408  }
  0x14   :  { %2289 = vmatprep.subr.mxu0 %v2737_v0  ;;  %2302 = vmatprep.subr.mxu1 %v2737_v0 }
  0x15   :  { %2290 = vmatpush3.msra.mxu0 %v2807_v4  ;;  %2303 = vmatpush3.msra.mxu1 %v2807_v4 }
  0x16   :  { %v51_v3 = vld [vmem:[#allocation2] sm:$0x3]  ;;  %v52_v5 = vld [vmem:[#allocation3] sm:$0x3]  ;;  %2291 = vmatprep.subr.mxu0 %v2737_v0  ;;  %2304 = vmatprep.subr.mxu1 %v2737_v0 }
  0x17   :  { %54 = vrot.lane.b32.xlu0 %v51_v3, %s2739_s1  ;;  %151 = vrot.lane.b32.xlu1 %v52_v5, %s2740_s8 }
  0x18   :  { %2292 = vmatpush3.msra.mxu0 %v2812_v6  ;;  %2305 = vmatpush3.msra.mxu1 %v2812_v6 }
  0x19   :  { %2293 = vmatprep.subr.mxu0 %v2737_v0  ;;  %2306 = vmatprep.subr.mxu1 %v2737_v0 }
  0x1a   :  { %2294 = vmatpush3.msra.mxu0 %v2818_v7  ;;  %2307 = vmatpush3.msra.mxu1 %v2818_v7 }
  0x1b   :  { %2311 = vmatprep.subr.mxu0 %v2737_v0  ;;  %2324 = vmatprep.subr.mxu1 %v2737_v0 }
  0x89   :  { %v55_v9 = vpop.permute.xlu0 %54  ;;  %v152_v22 = vpop.permute.xlu1 %151 }
  0x8a   :  { %v58_v10 = vsel %vm57_vm3, %v50_v8, %v55_v9 }
  0x8b   :  { %2296 = vmatmul.mubr.msk.f32.vlgmr.msra.gmra.mxu0 %vm65_vm4, %v58_v10 }
  0x8c   :  { %2312 = vmatpush3.msk.msra.mxu0 %vm69_vm2, %v2797_v1  ;;  %2321 = vmatprep.mubr.msk.f32.mxu0 %vm2738_vm1, %v2737_v0 }
  0x8d   :  { %2313 = vmatprep.subr.mxu0 %v2737_v0 }
  0x8e   :  { %2314 = vmatpush3.msra.mxu0 %v2799_v2 }
  0x8f   :  { %2315 = vmatprep.subr.mxu0 %v2737_v0 }
  0x90   :  { %2316 = vmatpush3.msra.mxu0 %v2807_v4 }
  0x91   :  { %2317 = vmatprep.subr.mxu0 %v2737_v0 }
  0x92   :  { %2318 = vmatpush3.msra.mxu0 %v2812_v6 }
  0x93   :  { %2319 = vmatprep.subr.mxu0 %v2737_v0 }
  0x94   :  { %2320 = vmatpush3.msra.mxu0 %v2818_v7 }
  0x95   :  { %2337 = vmatprep.subr.mxu0 %v2737_v0 }
 0x14b   :  { %v139_v12 = vpop.f32.mrf.mxu0 }
 0x14c   :  { %v140_v13 = vadd.f32 %v2852_v11, %v139_v12 }
 0x14d   :  { %v2297_v14 = vpop.f32.mrf.mxu0 }
 0x14e   :  { %2562 = vtanh.f32 %v140_v13  ;;  %v2112_v16 = vmul.f32 -1.442695, %v140_v13 }
 0x150   :  { %2564 = vpow2.f32 %v2112_v16 }
 0x15b   :  { %v2563_v15 = vpop.eup %2562 }
 0x15c   :  { %156 = vrot.lane.b32.xlu0 %v2563_v15, %s2741_s13 }
 0x15d   :  { %v2565_v17 = vpop.eup %2564 }
 0x15e   :  { %v146_v18 = vadd.f32 1.0, %v2565_v17 }
 0x160   :  { %2566 = vrcp.f32 %v146_v18 }
 0x16d   :  { %v2567_v19 = vpop.eup %2566 }
 0x16e   :  { %v154_v23 = vmul.f32 %v2567_v19, %v152_v22 }
 0x1ce   :  { %v157_v20 = vpop.permute.xlu0 %156 }
 0x1cf   :  { %v159_v21 = vmul.f32 %v2567_v19, %v157_v20 }
 0x1d1   :  { %161 = vrot.lane.b32.xlu1 %v159_v21, %s2740_s8 }
 0x243   :  { %v162_v24 = vpop.permute.xlu1 %161 }
 0x244   :  { %v164_v25 = vadd.f32 %v162_v24, %v154_v23  ;;  %v2121_v24 = vld [vmem:[%s3352_s0 + $0x6] sm:$0x3] }
 0x246   :  { %2568 = vtanh.f32 %v164_v25 }
 0x253   :  { %v2569_v26 = vpop.eup %2568 }
 0x254   :  { %167 = vrot.lane.b32.xlu0 %v2569_v26, %s2741_s13 }
 0x2c6   :  { %v168_v27 = vpop.permute.xlu0 %167 }
 0x2c7   :  { %v170_v28 = vmul.f32 %v2567_v19, %v168_v27 }
 0x2c9   :  { %177 = vrot.lane.b32.xlu1 %v170_v28, %s2740_s8 }
 0x2cd   :  { %172 = vrot.lane.b32.xlu1 %v164_v25, %s2742_s2 }
 0x33b   :  { %v178_v29 = vpop.permute.xlu1 %177 }
 0x33c   :  { %180 = vst.msk [vmem:[#allocation2] sm:$0x3] %vm47_vm0, %v178_v29  ;;  %181 = vst.msk [vmem:[#allocation4] sm:$0x3] %vm47_vm0, %v178_v29 }
 0x33f   :  { %v173_v30 = vpop.permute.xlu1 %172 }
 0x340   :  { %175 = vst.msk [vmem:[#allocation3] sm:$0x3] %vm47_vm0, %v173_v30 }
 0x343   :  { %v184_v31 = vld [vmem:[#allocation2] sm:$0x3] }
 0x344   :  { %187 = vrot.lane.b32.xlu0 %v184_v31, %s2739_s1 }
 0x347   :  { %v185_v32 = vld [vmem:[#allocation3] sm:$0x3] }
 0x348   :  { %272 = vrot.lane.b32.xlu1 %v185_v32, %s2740_s8 }
 0x3b6   :  { %v188_v34 = vpop.permute.xlu0 %187 }
 0x3b7   :  { %v190_v35 = vsel %vm57_vm3, %v2113_v33, %v188_v34 }
 0x3b8   :  { %2309 = vmatmul.mubr.msk.f32.vlgmr.msra.gmra.mxu1 %vm65_vm4, %v190_v35 }
 0x3b9   :  { %2325 = vmatpush3.msk.msra.mxu1 %vm69_vm2, %v2797_v1  ;;  %2334 = vmatprep.mubr.msk.f32.mxu1 %vm2738_vm1, %v2737_v0 }
 0x3ba   :  { %2326 = vmatprep.subr.mxu1 %v2737_v0  ;;  %v273_v46 = vpop.permute.xlu1 %272 }
 0x3bb   :  { %2327 = vmatpush3.msra.mxu1 %v2799_v2 }
 0x3bc   :  { %2328 = vmatprep.subr.mxu1 %v2737_v0 }
 0x3bd   :  { %2329 = vmatpush3.msra.mxu1 %v2807_v4 }
 0x3be   :  { %2330 = vmatprep.subr.mxu1 %v2737_v0 }
 0x3bf   :  { %2331 = vmatpush3.msra.mxu1 %v2812_v6 }
 0x3c0   :  { %2332 = vmatprep.subr.mxu1 %v2737_v0 }
 0x3c1   :  { %2333 = vmatpush3.msra.mxu1 %v2818_v7 }
 0x3c2   :  { %2350 = vmatprep.subr.mxu1 %v2737_v0 }
 0x478   :  { %v260_v36 = vpop.f32.mrf.mxu1 }
 0x479   :  { %v261_v37 = vadd.f32 %v2852_v11, %v260_v36 }
 0x47a   :  { %v2310_v38 = vpop.f32.mrf.mxu1 }
 0x47b   :  { %2570 = vtanh.f32 %v261_v37  ;;  %v2116_v40 = vmul.f32 -1.442695, %v261_v37 }
 0x47d   :  { %2572 = vpow2.f32 %v2116_v40 }
 0x488   :  { %v2571_v39 = vpop.eup %2570 }
 0x489   :  { %277 = vrot.lane.b32.xlu0 %v2571_v39, %s2741_s13 }
 0x48a   :  { %v2573_v41 = vpop.eup %2572 }
 0x48b   :  { %v267_v42 = vadd.f32 1.0, %v2573_v41 }
 0x48d   :  { %2574 = vrcp.f32 %v267_v42 }
 0x49a   :  { %v2575_v43 = vpop.eup %2574 }
 0x49b   :  { %v275_v47 = vmul.f32 %v2575_v43, %v273_v46 }
 0x4fb   :  { %v278_v44 = vpop.permute.xlu0 %277 }
 0x4fc   :  { %v280_v45 = vmul.f32 %v2575_v43, %v278_v44 }
 0x4fe   :  { %282 = vrot.lane.b32.xlu0 %v280_v45, %s2740_s8 }
 0x570   :  { %v283_v48 = vpop.permute.xlu0 %282 }
 0x571   :  { %v285_v49 = vadd.f32 %v283_v48, %v275_v47  ;;  %v2125_v48 = vld [vmem:[%s3352_s0 + $0x8] sm:$0x3] }
 0x573   :  { %2576 = vtanh.f32 %v285_v49 }
 0x580   :  { %v2577_v50 = vpop.eup %2576 }
 0x581   :  { %288 = vrot.lane.b32.xlu1 %v2577_v50, %s2741_s13 }
 0x5f3   :  { %v289_v51 = vpop.permute.xlu1 %288 }
 0x5f4   :  { %v291_v52 = vmul.f32 %v2575_v43, %v289_v51 }
 0x5f6   :  { %298 = vrot.lane.b32.xlu0 %v291_v52, %s2740_s8 }
 0x5fa   :  { %293 = vrot.lane.b32.xlu0 %v285_v49, %s2742_s2 }
 0x668   :  { %v299_v53 = vpop.permute.xlu0 %298 }
 0x669   :  { %301 = vst.msk [vmem:[#allocation2] sm:$0x3] %vm47_vm0, %v299_v53  ;;  %303 = vst.msk [vmem:[#allocation4 + $0x2] sm:$0x3] %vm47_vm0, %v299_v53 }
 0x66c   :  { %v294_v54 = vpop.permute.xlu0 %293 }
 0x66d   :  { %296 = vst.msk [vmem:[#allocation3] sm:$0x3] %vm47_vm0, %v294_v54 }
 0x670   :  { %v306_v55 = vld [vmem:[#allocation2] sm:$0x3] }
 0x671   :  { %309 = vrot.lane.b32.xlu1 %v306_v55, %s2739_s1 }
 0x674   :  { %v307_v56 = vld [vmem:[#allocation3] sm:$0x3] }
 0x675   :  { %394 = vrot.lane.b32.xlu0 %v307_v56, %s2740_s8 }
 0x6e3   :  { %v310_v58 = vpop.permute.xlu1 %309 }
 0x6e4   :  { %v312_v59 = vsel %vm57_vm3, %v2117_v57, %v310_v58 }
 0x6e5   :  { %2322 = vmatmul.mubr.msk.f32.vlgmr.msra.gmra.mxu0 %vm65_vm4, %v312_v59 }
 0x6e6   :  { %2338 = vmatpush3.msk.msra.mxu0 %vm69_vm2, %v2797_v1  ;;  %2347 = vmatprep.mubr.msk.f32.mxu0 %vm2738_vm1, %v2737_v0 }
 0x6e7   :  { %2339 = vmatprep.subr.mxu0 %v2737_v0  ;;  %v395_v13 = vpop.permute.xlu0 %394 }
 0x6e8   :  { %2340 = vmatpush3.msra.mxu0 %v2799_v2 }
 0x6e9   :  { %2341 = vmatprep.subr.mxu0 %v2737_v0 }
 0x6ea   :  { %2342 = vmatpush3.msra.mxu0 %v2807_v4 }
 0x6eb   :  { %2343 = vmatprep.subr.mxu0 %v2737_v0 }
 0x6ec   :  { %2344 = vmatpush3.msra.mxu0 %v2812_v6 }
 0x6ed   :  { %2345 = vmatprep.subr.mxu0 %v2737_v0 }
 0x6ee   :  { %2346 = vmatpush3.msra.mxu0 %v2818_v7 }
 0x6ef   :  { %2363 = vmatprep.subr.mxu0 %v2737_v0 }
 0x7a5   :  { %v382_v60 = vpop.f32.mrf.mxu0 }
 0x7a6   :  { %v383_v61 = vadd.f32 %v2852_v11, %v382_v60 }
 0x7a7   :  { %v2323_v62 = vpop.f32.mrf.mxu0 }
 0x7a8   :  { %2578 = vtanh.f32 %v383_v61  ;;  %v2120_v3 = vmul.f32 -1.442695, %v383_v61 }
 0x7aa   :  { %2580 = vpow2.f32 %v2120_v3 }
 0x7b5   :  { %v2579_v63 = vpop.eup %2578 }
 0x7b6   :  { %399 = vrot.lane.b32.xlu1 %v2579_v63, %s2741_s13 }
 0x7b7   :  { %v2581_v5 = vpop.eup %2580 }
 0x7b8   :  { %v389_v8 = vadd.f32 1.0, %v2581_v5 }
 0x7ba   :  { %2582 = vrcp.f32 %v389_v8 }
 0x7c7   :  { %v2583_v9 = vpop.eup %2582 }
 0x7c8   :  { %v397_v14 = vmul.f32 %v2583_v9, %v395_v13 }
 0x828   :  { %v400_v10 = vpop.permute.xlu1 %399 }
 0x829   :  { %v402_v12 = vmul.f32 %v2583_v9, %v400_v10 }
 0x82b   :  { %404 = vrot.lane.b32.xlu1 %v402_v12, %s2740_s8 }
 0x89d   :  { %v405_v15 = vpop.permute.xlu1 %404 }
 0x89e   :  { %v407_v16 = vadd.f32 %v405_v15, %v397_v14  ;;  %v2129_v15 = vld [vmem:[%s3352_s0 + $0xa] sm:$0x3] }
 0x8a0   :  { %2584 = vtanh.f32 %v407_v16 }
 0x8ad   :  { %v2585_v17 = vpop.eup %2584 }
 0x8ae   :  { %410 = vrot.lane.b32.xlu0 %v2585_v17, %s2741_s13 }
 0x920   :  { %v411_v18 = vpop.permute.xlu0 %410 }
 0x921   :  { %v413_v19 = vmul.f32 %v2583_v9, %v411_v18 }
 0x923   :  { %420 = vrot.lane.b32.xlu1 %v413_v19, %s2740_s8 }
 0x927   :  { %415 = vrot.lane.b32.xlu1 %v407_v16, %s2742_s2 }
 0x995   :  { %v421_v20 = vpop.permute.xlu1 %420 }
 0x996   :  { %423 = vst.msk [vmem:[#allocation2] sm:$0x3] %vm47_vm0, %v421_v20  ;;  %425 = vst.msk [vmem:[#allocation4 + $0x4] sm:$0x3] %vm47_vm0, %v421_v20 }
 0x999   :  { %v416_v21 = vpop.permute.xlu1 %415 }
 0x99a   :  { %418 = vst.msk [vmem:[#allocation3] sm:$0x3] %vm47_vm0, %v416_v21 }
 0x99d   :  { %v428_v22 = vld [vmem:[#allocation2] sm:$0x3] }
 0x99e   :  { %431 = vrot.lane.b32.xlu0 %v428_v22, %s2739_s1 }
 0x9a1   :  { %v429_v23 = vld [vmem:[#allocation3] sm:$0x3] }
 0x9a2   :  { %516 = vrot.lane.b32.xlu1 %v429_v23, %s2740_s8 }
 0xa10   :  { %v432_v25 = vpop.permute.xlu0 %431 }
 0xa11   :  { %v434_v26 = vsel %vm57_vm3, %v2121_v24, %v432_v25 }
 0xa12   :  { %2335 = vmatmul.mubr.msk.f32.vlgmr.msra.gmra.mxu1 %vm65_vm4, %v434_v26 }
 0xa13   :  { %2351 = vmatpush3.msk.msra.mxu1 %vm69_vm2, %v2797_v1  ;;  %2360 = vmatprep.mubr.msk.f32.mxu1 %vm2738_vm1, %v2737_v0 }
 0xa14   :  { %2352 = vmatprep.subr.mxu1 %v2737_v0  ;;  %v517_v37 = vpop.permute.xlu1 %516 }
 0xa15   :  { %2353 = vmatpush3.msra.mxu1 %v2799_v2 }
 0xa16   :  { %2354 = vmatprep.subr.mxu1 %v2737_v0 }
 0xa17   :  { %2355 = vmatpush3.msra.mxu1 %v2807_v4 }
 0xa18   :  { %2356 = vmatprep.subr.mxu1 %v2737_v0 }
 0xa19   :  { %2357 = vmatpush3.msra.mxu1 %v2812_v6 }
 0xa1a   :  { %2358 = vmatprep.subr.mxu1 %v2737_v0 }
 0xa1b   :  { %2359 = vmatpush3.msra.mxu1 %v2818_v7 }
 0xa1c   :  { %2376 = vmatprep.subr.mxu1 %v2737_v0 }
 0xad2   :  { %v504_v27 = vpop.f32.mrf.mxu1 }
 0xad3   :  { %v505_v28 = vadd.f32 %v2852_v11, %v504_v27 }
 0xad4   :  { %v2336_v29 = vpop.f32.mrf.mxu1 }
 0xad5   :  { %2586 = vtanh.f32 %v505_v28  ;;  %v2124_v31 = vmul.f32 -1.442695, %v505_v28 }
 0xad7   :  { %2588 = vpow2.f32 %v2124_v31 }
 0xae2   :  { %v2587_v30 = vpop.eup %2586 }
 0xae3   :  { %521 = vrot.lane.b32.xlu0 %v2587_v30, %s2741_s13 }
 0xae4   :  { %v2589_v32 = vpop.eup %2588 }
 0xae5   :  { %v511_v33 = vadd.f32 1.0, %v2589_v32 }
 0xae7   :  { %2590 = vrcp.f32 %v511_v33 }
 0xaf4   :  { %v2591_v34 = vpop.eup %2590 }
 0xaf5   :  { %v519_v38 = vmul.f32 %v2591_v34, %v517_v37 }
 0xb55   :  { %v522_v35 = vpop.permute.xlu0 %521 }
 0xb56   :  { %v524_v36 = vmul.f32 %v2591_v34, %v522_v35 }
 0xb58   :  { %526 = vrot.lane.b32.xlu0 %v524_v36, %s2740_s8 }
 0xbca   :  { %v527_v39 = vpop.permute.xlu0 %526 }
 0xbcb   :  { %v529_v40 = vadd.f32 %v527_v39, %v519_v38 }
 0xbcd   :  { %2592 = vtanh.f32 %v529_v40 }
 0xbda   :  { %v2593_v41 = vpop.eup %2592 }
 0xbdb   :  { %532 = vrot.lane.b32.xlu1 %v2593_v41, %s2741_s13 }
 0xc4d   :  { %v533_v42 = vpop.permute.xlu1 %532 }
 0xc4e   :  { %v535_v43 = vmul.f32 %v2591_v34, %v533_v42  ;;  %v2133_v34 = vld [vmem:[%s3352_s0 + $0xc] sm:$0x3] }
 0xc50   :  { %542 = vrot.lane.b32.xlu0 %v535_v43, %s2740_s8 }
 0xc54   :  { %537 = vrot.lane.b32.xlu0 %v529_v40, %s2742_s2 }
 0xcc2   :  { %v543_v44 = vpop.permute.xlu0 %542 }
 0xcc3   :  { %545 = vst.msk [vmem:[#allocation2] sm:$0x3] %vm47_vm0, %v543_v44  ;;  %547 = vst.msk [vmem:[#allocation4 + $0x6] sm:$0x3] %vm47_vm0, %v543_v44 }
 0xcc6   :  { %v538_v45 = vpop.permute.xlu0 %537 }
 0xcc7   :  { %540 = vst.msk [vmem:[#allocation3] sm:$0x3] %vm47_vm0, %v538_v45 }
 0xcca   :  { %v550_v46 = vld [vmem:[#allocation2] sm:$0x3] }
 0xccb   :  { %553 = vrot.lane.b32.xlu1 %v550_v46, %s2739_s1 }
 0xcce   :  { %v551_v47 = vld [vmem:[#allocation3] sm:$0x3] }
 0xccf   :  { %638 = vrot.lane.b32.xlu0 %v551_v47, %s2740_s8 }
 0xd3d   :  { %v554_v49 = vpop.permute.xlu1 %553 }
 0xd3e   :  { %v556_v50 = vsel %vm57_vm3, %v2125_v48, %v554_v49 }
 0xd3f   :  { %2348 = vmatmul.mubr.msk.f32.vlgmr.msra.gmra.mxu0 %vm65_vm4, %v556_v50 }
 0xd40   :  { %2364 = vmatpush3.msk.msra.mxu0 %vm69_vm2, %v2797_v1  ;;  %2373 = vmatprep.mubr.msk.f32.mxu0 %vm2738_vm1, %v2737_v0 }
 0xd41   :  { %2365 = vmatprep.subr.mxu0 %v2737_v0  ;;  %v639_v61 = vpop.permute.xlu0 %638 }
 0xd42   :  { %2366 = vmatpush3.msra.mxu0 %v2799_v2 }
 0xd43   :  { %2367 = vmatprep.subr.mxu0 %v2737_v0 }
 0xd44   :  { %2368 = vmatpush3.msra.mxu0 %v2807_v4 }
 0xd45   :  { %2369 = vmatprep.subr.mxu0 %v2737_v0 }
 0xd46   :  { %2370 = vmatpush3.msra.mxu0 %v2812_v6 }
 0xd47   :  { %2371 = vmatprep.subr.mxu0 %v2737_v0 }
 0xd48   :  { %2372 = vmatpush3.msra.mxu0 %v2818_v7 }
 0xd49   :  { %2389 = vmatprep.subr.mxu0 %v2737_v0 }
 0xdff   :  { %v626_v51 = vpop.f32.mrf.mxu0 }
 0xe00   :  { %v627_v52 = vadd.f32 %v2852_v11, %v626_v51 }
 0xe01   :  { %v2349_v53 = vpop.f32.mrf.mxu0 }
 0xe02   :  { %2594 = vtanh.f32 %v627_v52  ;;  %v2128_v55 = vmul.f32 -1.442695, %v627_v52 }
 0xe04   :  { %2596 = vpow2.f32 %v2128_v55 }
 0xe0f   :  { %v2595_v54 = vpop.eup %2594 }
 0xe10   :  { %643 = vrot.lane.b32.xlu1 %v2595_v54, %s2741_s13 }
 0xe11   :  { %v2597_v56 = vpop.eup %2596 }
 0xe12   :  { %v633_v57 = vadd.f32 1.0, %v2597_v56 }
 0xe14   :  { %2598 = vrcp.f32 %v633_v57 }
 0xe21   :  { %v2599_v58 = vpop.eup %2598 }
 0xe22   :  { %v641_v62 = vmul.f32 %v2599_v58, %v639_v61 }
 0xe82   :  { %v644_v59 = vpop.permute.xlu1 %643 }
 0xe83   :  { %v646_v60 = vmul.f32 %v2599_v58, %v644_v59 }
 0xe85   :  { %648 = vrot.lane.b32.xlu1 %v646_v60, %s2740_s8 }
 0xef7   :  { %v649_v63 = vpop.permute.xlu1 %648 }
 0xef8   :  { %v651_v3 = vadd.f32 %v649_v63, %v641_v62 }
 0xefa   :  { %2600 = vtanh.f32 %v651_v3 }
 0xf07   :  { %v2601_v5 = vpop.eup %2600 }
 0xf08   :  { %654 = vrot.lane.b32.xlu0 %v2601_v5, %s2741_s13 }
 0xf7a   :  { %v655_v8 = vpop.permute.xlu0 %654 }
 0xf7b   :  { %v657_v9 = vmul.f32 %v2599_v58, %v655_v8  ;;  %v2137_v58 = vld [vmem:[%s3352_s0 + $0xe] sm:$0x3] }
 0xf7d   :  { %664 = vrot.lane.b32.xlu1 %v657_v9, %s2740_s8 }
 0xf81   :  { %659 = vrot.lane.b32.xlu1 %v651_v3, %s2742_s2 }
 0xfef   :  { %v665_v10 = vpop.permute.xlu1 %664 }
 0xff0   :  { %667 = vst.msk [vmem:[#allocation2] sm:$0x3] %vm47_vm0, %v665_v10  ;;  %669 = vst.msk [vmem:[#allocation4 + $0x8] sm:$0x3] %vm47_vm0, %v665_v10 }
 0xff3   :  { %v660_v12 = vpop.permute.xlu1 %659 }
 0xff4   :  { %662 = vst.msk [vmem:[#allocation3] sm:$0x3] %vm47_vm0, %v660_v12 }
 0xff7   :  { %v672_v13 = vld [vmem:[#allocation2] sm:$0x3] }
 0xff8   :  { %675 = vrot.lane.b32.xlu0 %v672_v13, %s2739_s1 }
 0xffb   :  { %v673_v14 = vld [vmem:[#allocation3] sm:$0x3] }
 0xffc   :  { %760 = vrot.lane.b32.xlu1 %v673_v14, %s2740_s8 }
0x106a   :  { %v676_v16 = vpop.permute.xlu0 %675 }
0x106b   :  { %v678_v17 = vsel %vm57_vm3, %v2129_v15, %v676_v16 }
0x106c   :  { %2361 = vmatmul.mubr.msk.f32.vlgmr.msra.gmra.mxu1 %vm65_vm4, %v678_v17 }
0x106d   :  { %2377 = vmatpush3.msk.msra.mxu1 %vm69_vm2, %v2797_v1  ;;  %2386 = vmatprep.mubr.msk.f32.mxu1 %vm2738_vm1, %v2737_v0 }
0x106e   :  { %2378 = vmatprep.subr.mxu1 %v2737_v0 }
0x106f   :  { %2379 = vmatpush3.msra.mxu1 %v2799_v2 }
0x1070   :  { %2380 = vmatprep.subr.mxu1 %v2737_v0 }
0x1071   :  { %2381 = vmatpush3.msra.mxu1 %v2807_v4 }
0x1072   :  { %2382 = vmatprep.subr.mxu1 %v2737_v0 }
0x1073   :  { %2383 = vmatpush3.msra.mxu1 %v2812_v6 }
0x1074   :  { %2384 = vmatprep.subr.mxu1 %v2737_v0 }
0x1075   :  { %2385 = vmatpush3.msra.mxu1 %v2818_v7  ;;  %v761_v7 = vpop.permute.xlu1 %760 }
0x1076   :  { %2408 = vmatprep.subr.mxu1 %v2737_v0 }
0x112c   :  { %v748_v1 = vpop.f32.mrf.mxu1 }
0x112d   :  { %v749_v18 = vadd.f32 %v2852_v11, %v748_v1  ;;  %v3042_v1 = vld [vmem:[%s3355_s3 + $0x38] sm:$0xff] }
0x112e   :  { %v2362_v19 = vpop.f32.mrf.mxu1 }
0x112f   :  { %2602 = vtanh.f32 %v749_v18  ;;  %v2132_v20 = vmul.f32 -1.442695, %v749_v18  ;;  %v3047_v18 = vld [vmem:[%s3355_s3 + $0x30] sm:$0xff] }
0x1131   :  { %2604 = vpow2.f32 %v2132_v20  ;;  %v3055_v20 = vld [vmem:[%s3355_s3 + $0x28] sm:$0xff] }
0x113c   :  { %v2603_v2 = vpop.eup %2602 }
0x113d   :  { %765 = vrot.lane.b32.xlu0 %v2603_v2, %s2741_s13 }
0x113e   :  { %v2605_v4 = vpop.eup %2604 }
0x113f   :  { %v755_v21 = vadd.f32 1.0, %v2605_v4  ;;  %v3065_v4 = vld [vmem:[%s3355_s3 + $0x20] sm:$0xff] }
0x1141   :  { %2606 = vrcp.f32 %v755_v21  ;;  %v3073_v21 = vld [vmem:[%s3355_s3 + $0x18] sm:$0xff] }
0x114e   :  { %v2607_v6 = vpop.eup %2606 }
0x114f   :  { %v763_v24 = vmul.f32 %v2607_v6, %v761_v7 }
0x11af   :  { %v766_v22 = vpop.permute.xlu0 %765 }
0x11b0   :  { %v768_v23 = vmul.f32 %v2607_v6, %v766_v22  ;;  %v3091_v22 = vld [vmem:[%s3355_s3 + $0x8] sm:$0xff] }
0x11b2   :  { %770 = vrot.lane.b32.xlu0 %v768_v23, %s2740_s8  ;;  %v3107_v23 = vld [vmem:[%s3355_s3] sm:$0xff] }
0x1224   :  { %v771_v25 = vpop.permute.xlu0 %770 }
0x1225   :  { %v773_v26 = vadd.f32 %v771_v25, %v763_v24 }
0x1227   :  { %2608 = vtanh.f32 %v773_v26 }
0x1234   :  { %v2609_v27 = vpop.eup %2608 }
0x1235   :  { %776 = vrot.lane.b32.xlu1 %v2609_v27, %s2741_s13  ;;  %v1047_v27 = vld [vmem:[#allocation4] sm:$0x3] }
0x12a7   :  { %v777_v28 = vpop.permute.xlu1 %776 }
0x12a8   :  { %v779_v29 = vmul.f32 %v2607_v6, %v777_v28  ;;  %v3083_v6 = vld [vmem:[%s3355_s3 + $0x10] sm:$0xff] }
0x12aa   :  { %786 = vrot.lane.b32.xlu0 %v779_v29, %s2740_s8 }
0x12ae   :  { %781 = vrot.lane.b32.xlu0 %v773_v26, %s2742_s2 }
0x131c   :  { %v787_v30 = vpop.permute.xlu0 %786 }
0x131d   :  { %789 = vst.msk [vmem:[#allocation2] sm:$0x3] %vm47_vm0, %v787_v30  ;;  %791 = vst.msk [vmem:[#allocation4 + $0xa] sm:$0x3] %vm47_vm0, %v787_v30  ;;  %v3145_v30 = vld [vmem:[%s3356_s4] ss:$0 sm:$0xff] }
0x1320   :  { %v782_v31 = vpop.permute.xlu0 %781 }
0x1321   :  { %784 = vst.msk [vmem:[#allocation3] sm:$0x3] %vm47_vm0, %v782_v31 }
0x1324   :  { %v794_v32 = vld [vmem:[#allocation2] sm:$0x3] }
0x1325   :  { %797 = vrot.lane.b32.xlu1 %v794_v32, %s2739_s1 }
0x1328   :  { %v795_v33 = vld [vmem:[#allocation3] sm:$0x3] }
0x1329   :  { %882 = vrot.lane.b32.xlu0 %v795_v33, %s2740_s8 }
0x1397   :  { %v798_v35 = vpop.permute.xlu1 %797 }
0x1398   :  { %v800_v36 = vsel %vm57_vm3, %v2133_v34, %v798_v35 }
0x1399   :  { %2374 = vmatmul.mubr.msk.f32.vlgmr.msra.gmra.mxu0 %vm65_vm4, %v800_v36 }
0x139a   :  { %2405 = vmatprep.mubr.msk.f32.mxu0 %vm2738_vm1, %v2737_v0  ;;  %2390 = vmatpush3.msra.mxu0 %v3042_v1 }
0x139b   :  { %v883_v47 = vpop.permute.xlu0 %882  ;;  %2391 = vmatprep.subr.mxu0 %v2737_v0 }
0x139c   :  { %2392 = vmatpush3.msra.mxu0 %v3047_v18 }
0x139d   :  { %2393 = vmatprep.subr.mxu0 %v2737_v0 }
0x139e   :  { %2394 = vmatpush3.msra.mxu0 %v3055_v20 }
0x139f   :  { %2395 = vmatprep.subr.mxu0 %v2737_v0 }
0x13a0   :  { %2396 = vmatpush3.msra.mxu0 %v3065_v4 }
0x13a1   :  { %2397 = vmatprep.subr.mxu0 %v2737_v0 }
0x13a2   :  { %2398 = vmatpush3.msra.mxu0 %v3073_v21 }
0x13a3   :  { %2399 = vmatprep.subr.mxu0 %v2737_v0 }
0x13a4   :  { %2400 = vmatpush3.msra.mxu0 %v3083_v6 }
0x13a5   :  { %2401 = vmatprep.subr.mxu0 %v2737_v0 }
0x13a6   :  { %2402 = vmatpush3.msra.mxu0 %v3091_v22 }
0x13a7   :  { %2403 = vmatprep.subr.mxu0 %v2737_v0 }
0x13a8   :  { %2404 = vmatpush3.msra.mxu0 %v3107_v23 }
0x13a9   :  { %2427 = vmatprep.subr.mxu0 %v2737_v0 }
0x1459   :  { %v870_v37 = vpop.f32.mrf.mxu0 }
0x145a   :  { %v871_v38 = vadd.f32 %v2852_v11, %v870_v37 }
0x145b   :  { %v2375_v39 = vpop.f32.mrf.mxu0 }
0x145c   :  { %2610 = vtanh.f32 %v871_v38  ;;  %v2136_v41 = vmul.f32 -1.442695, %v871_v38 }
0x145e   :  { %2612 = vpow2.f32 %v2136_v41 }
0x1469   :  { %v2611_v40 = vpop.eup %2610 }
0x146a   :  { %887 = vrot.lane.b32.xlu1 %v2611_v40, %s2741_s13 }
0x146b   :  { %v2613_v42 = vpop.eup %2612 }
0x146c   :  { %v877_v43 = vadd.f32 1.0, %v2613_v42 }
0x146e   :  { %2614 = vrcp.f32 %v877_v43 }
0x147b   :  { %v2615_v44 = vpop.eup %2614 }
0x147c   :  { %v885_v48 = vmul.f32 %v2615_v44, %v883_v47 }
0x14dc   :  { %v888_v45 = vpop.permute.xlu1 %887 }
0x14dd   :  { %v890_v46 = vmul.f32 %v2615_v44, %v888_v45 }
0x14df   :  { %892 = vrot.lane.b32.xlu1 %v890_v46, %s2740_s8 }
0x1551   :  { %v893_v49 = vpop.permute.xlu1 %892 }
0x1552   :  { %v895_v50 = vadd.f32 %v893_v49, %v885_v48 }
0x1554   :  { %2616 = vtanh.f32 %v895_v50 }
0x1561   :  { %v2617_v51 = vpop.eup %2616 }
0x1562   :  { %898 = vrot.lane.b32.xlu0 %v2617_v51, %s2741_s13 }
0x15d4   :  { %v899_v52 = vpop.permute.xlu0 %898 }
0x15d5   :  { %v901_v53 = vmul.f32 %v2615_v44, %v899_v52  ;;  %v1174_v52 = vld [vmem:[#allocation4 + $0x2] sm:$0x3] }
0x15d7   :  { %908 = vrot.lane.b32.xlu1 %v901_v53, %s2740_s8 }
0x15db   :  { %903 = vrot.lane.b32.xlu1 %v895_v50, %s2742_s2 }
0x1649   :  { %v909_v54 = vpop.permute.xlu1 %908 }
0x164a   :  { %911 = vst.msk [vmem:[#allocation2] sm:$0x3] %vm47_vm0, %v909_v54  ;;  %913 = vst.msk [vmem:[#allocation4 + $0xc] sm:$0x3] %vm47_vm0, %v909_v54 }
0x164d   :  { %v904_v55 = vpop.permute.xlu1 %903 }
0x164e   :  { %906 = vst.msk [vmem:[#allocation3] sm:$0x3] %vm47_vm0, %v904_v55 }
0x1651   :  { %v916_v56 = vld [vmem:[#allocation2] sm:$0x3] }
0x1652   :  { %919 = vrot.lane.b32.xlu0 %v916_v56, %s2739_s1 }
0x1655   :  { %v917_v57 = vld [vmem:[#allocation3] sm:$0x3] }
0x1656   :  { %1004 = vrot.lane.b32.xlu1 %v917_v57, %s2740_s8 }
0x16c4   :  { %v920_v59 = vpop.permute.xlu0 %919 }
0x16c5   :  { %v922_v60 = vsel %vm57_vm3, %v2137_v58, %v920_v59 }
0x16c6   :  { %2387 = vmatmul.mubr.msk.f32.vlgmr.msra.gmra.mxu1 %vm65_vm4, %v922_v60 }
0x16c7   :  { %2424 = vmatprep.mubr.msk.f32.mxu1 %vm2738_vm1, %v2737_v0  ;;  %2409 = vmatpush3.msra.mxu1 %v3042_v1 }
0x16c8   :  { %v1005_v14 = vpop.permute.xlu1 %1004  ;;  %2410 = vmatprep.subr.mxu1 %v2737_v0 }
0x16c9   :  { %2411 = vmatpush3.msra.mxu1 %v3047_v18 }
0x16ca   :  { %2412 = vmatprep.subr.mxu1 %v2737_v0 }
0x16cb   :  { %2413 = vmatpush3.msra.mxu1 %v3055_v20 }
0x16cc   :  { %2414 = vmatprep.subr.mxu1 %v2737_v0 }
0x16cd   :  { %2415 = vmatpush3.msra.mxu1 %v3065_v4 }
0x16ce   :  { %2416 = vmatprep.subr.mxu1 %v2737_v0 }
0x16cf   :  { %2417 = vmatpush3.msra.mxu1 %v3073_v21 }
0x16d0   :  { %2418 = vmatprep.subr.mxu1 %v2737_v0 }
0x16d1   :  { %2419 = vmatpush3.msra.mxu1 %v3083_v6 }
0x16d2   :  { %2420 = vmatprep.subr.mxu1 %v2737_v0 }
0x16d3   :  { %2421 = vmatpush3.msra.mxu1 %v3091_v22 }
0x16d4   :  { %2422 = vmatprep.subr.mxu1 %v2737_v0 }
0x16d5   :  { %2423 = vmatpush3.msra.mxu1 %v3107_v23 }
0x16d6   :  { %2446 = vmatprep.subr.mxu1 %v2737_v0 }
0x1786   :  { %v992_v61 = vpop.f32.mrf.mxu1 }
0x1787   :  { %v993_v62 = vadd.f32 %v2852_v11, %v992_v61 }
0x1788   :  { %v2388_v63 = vpop.f32.mrf.mxu1 }
0x1789   :  { %2618 = vtanh.f32 %v993_v62  ;;  %v2140_v5 = vmul.f32 -1.442695, %v993_v62 }
0x178b   :  { %2620 = vpow2.f32 %v2140_v5 }
0x1796   :  { %v2619_v3 = vpop.eup %2618 }
0x1797   :  { %1009 = vrot.lane.b32.xlu0 %v2619_v3, %s2741_s13 }
0x1798   :  { %v2621_v8 = vpop.eup %2620 }
0x1799   :  { %v999_v9 = vadd.f32 1.0, %v2621_v8 }
0x179b   :  { %2622 = vrcp.f32 %v999_v9 }
0x17a8   :  { %v2623_v10 = vpop.eup %2622 }
0x17a9   :  { %v1007_v15 = vmul.f32 %v2623_v10, %v1005_v14 }
0x1809   :  { %v1010_v12 = vpop.permute.xlu0 %1009 }
0x180a   :  { %v1012_v13 = vmul.f32 %v2623_v10, %v1010_v12 }
0x180c   :  { %1014 = vrot.lane.b32.xlu0 %v1012_v13, %s2740_s8 }
0x187e   :  { %v1015_v16 = vpop.permute.xlu0 %1014 }
0x187f   :  { %v1017_v17 = vadd.f32 %v1015_v16, %v1007_v15 }
0x1881   :  { %2624 = vtanh.f32 %v1017_v17 }
0x188e   :  { %v2625_v11 = vpop.eup %2624 }
0x188f   :  { %1020 = vrot.lane.b32.xlu1 %v2625_v11, %s2741_s13 }
0x1901   :  { %v1021_v19 = vpop.permute.xlu1 %1020 }
0x1902   :  { %v1023_v2 = vmul.f32 %v2623_v10, %v1021_v19  ;;  %v1293_v19 = vld [vmem:[#allocation4 + $0x4] sm:$0x3] }
0x1904   :  { %1030 = vrot.lane.b32.xlu0 %v1023_v2, %s2740_s8 }
0x1908   :  { %1025 = vrot.lane.b32.xlu0 %v1017_v17, %s2742_s2 }
0x1976   :  { %v1031_v7 = vpop.permute.xlu0 %1030 }
0x1977   :  { %1033 = vst.msk [vmem:[#allocation2] sm:$0x3] %vm47_vm0, %v1031_v7  ;;  %1035 = vst.msk [vmem:[#allocation4 + $0xe] sm:$0x3] %vm47_vm0, %v1031_v7 }
0x1978   :  { %1045 = vst.msk [vmem:[#allocation2] sm:$0x3] %vm47_vm0, %v2737_v0 }
0x197a   :  { %v1026_v24 = vpop.permute.xlu0 %1025 }
0x197b   :  { %1028 = vst.msk [vmem:[#allocation3] sm:$0x3] %vm47_vm0, %v1026_v24 }
0x197c   :  { %1046 = vst.msk [vmem:[#allocation3] sm:$0x3] %vm47_vm0, %v2737_v0 }
0x197f   :  { %v1048_v25 = vld [vmem:[#allocation2] sm:$0x3] }
0x1980   :  { %1051 = vrot.lane.b32.xlu1 %v1048_v25, %s2740_s8 }
0x1983   :  { %v1049_v26 = vld [vmem:[#allocation3] sm:$0x3] }
0x1984   :  { %1144 = vrot.lane.b32.xlu0 %v1049_v26, %s2740_s8 }
0x19f2   :  { %v1052_v28 = vpop.permute.xlu1 %1051 }
0x19f3   :  { %v1055_v29 = vsel %vm1054_vm5, %v1047_v27, %v1052_v28 }
0x19f4   :  { %2406 = vmatmul.mubr.msk.f32.vlgmr.msra.gmra.mxu0 %vm1062_vm6, %v1055_v29 }
0x19f5   :  { %2428 = vmatpush3.msra.mxu0 %v3042_v1  ;;  %2443 = vmatprep.mubr.msk.f32.mxu0 %vm2738_vm1, %v2737_v0 }
0x19f6   :  { %2429 = vmatprep.subr.mxu0 %v2737_v0  ;;  %v1145_v41 = vpop.permute.xlu0 %1144 }
0x19f7   :  { %2430 = vmatpush3.msra.mxu0 %v3047_v18 }
0x19f8   :  { %2431 = vmatprep.subr.mxu0 %v2737_v0 }
0x19f9   :  { %2432 = vmatpush3.msra.mxu0 %v3055_v20 }
0x19fa   :  { %2433 = vmatprep.subr.mxu0 %v2737_v0 }
0x19fb   :  { %2434 = vmatpush3.msra.mxu0 %v3065_v4 }
0x19fc   :  { %2435 = vmatprep.subr.mxu0 %v2737_v0 }
0x19fd   :  { %2436 = vmatpush3.msra.mxu0 %v3073_v21 }
0x19fe   :  { %2437 = vmatprep.subr.mxu0 %v2737_v0 }
0x19ff   :  { %2438 = vmatpush3.msra.mxu0 %v3083_v6 }
0x1a00   :  { %2439 = vmatprep.subr.mxu0 %v2737_v0 }
0x1a01   :  { %2440 = vmatpush3.msra.mxu0 %v3091_v22 }
0x1a02   :  { %2441 = vmatprep.subr.mxu0 %v2737_v0 }
0x1a03   :  { %2442 = vmatpush3.msra.mxu0 %v3107_v23 }
0x1a04   :  { %2465 = vmatprep.subr.mxu0 %v2737_v0 }
0x1ab4   :  { %v1132_v31 = vpop.f32.mrf.mxu0 }
0x1ab5   :  { %v1133_v32 = vadd.f32 %v3145_v30, %v1132_v31 }
0x1ab6   :  { %v2407_v33 = vpop.f32.mrf.mxu0 }
0x1ab7   :  { %2626 = vtanh.f32 %v1133_v32  ;;  %v2143_v35 = vmul.f32 -1.442695, %v1133_v32 }
0x1ab9   :  { %2628 = vpow2.f32 %v2143_v35 }
0x1ac4   :  { %v2627_v34 = vpop.eup %2626 }
0x1ac5   :  { %1149 = vrot.lane.b32.xlu1 %v2627_v34, %s2741_s13 }
0x1ac6   :  { %v2629_v36 = vpop.eup %2628 }
0x1ac7   :  { %v1139_v37 = vadd.f32 1.0, %v2629_v36 }
0x1ac9   :  { %2630 = vrcp.f32 %v1139_v37 }
0x1ad6   :  { %v2631_v38 = vpop.eup %2630 }
0x1ad7   :  { %v1147_v42 = vmul.f32 %v2631_v38, %v1145_v41 }
0x1b37   :  { %v1150_v39 = vpop.permute.xlu1 %1149 }
0x1b38   :  { %v1152_v40 = vmul.f32 %v2631_v38, %v1150_v39 }
0x1b3a   :  { %1154 = vrot.lane.b32.xlu1 %v1152_v40, %s2740_s8 }
0x1bac   :  { %v1155_v43 = vpop.permute.xlu1 %1154 }
0x1bad   :  { %v1157_v44 = vadd.f32 %v1155_v43, %v1147_v42 }
0x1baf   :  { %2632 = vtanh.f32 %v1157_v44 }
0x1bbc   :  { %v2633_v45 = vpop.eup %2632 }
0x1bbd   :  { %1160 = vrot.lane.b32.xlu0 %v2633_v45, %s2741_s13 }
0x1c2f   :  { %v1161_v46 = vpop.permute.xlu0 %1160 }
0x1c30   :  { %v1163_v47 = vmul.f32 %v2631_v38, %v1161_v46  ;;  %v1412_v46 = vld [vmem:[#allocation4 + $0x6] sm:$0x3] }
0x1c32   :  { %1170 = vrot.lane.b32.xlu1 %v1163_v47, %s2740_s8 }
0x1c36   :  { %1165 = vrot.lane.b32.xlu1 %v1157_v44, %s2742_s2 }
0x1ca4   :  { %v1171_v48 = vpop.permute.xlu1 %1170 }
0x1ca5   :  { %1173 = vst.msk [vmem:[#allocation2] sm:$0x3] %vm47_vm0, %v1171_v48 }
0x1ca8   :  { %v1166_v49 = vpop.permute.xlu1 %1165 }
0x1ca9   :  { %1168 = vst.msk [vmem:[#allocation3] sm:$0x3] %vm47_vm0, %v1166_v49 }
0x1cac   :  { %v1175_v50 = vld [vmem:[#allocation2] sm:$0x3] }
0x1cad   :  { %1178 = vrot.lane.b32.xlu0 %v1175_v50, %s2740_s8 }
0x1cb0   :  { %v1176_v51 = vld [vmem:[#allocation3] sm:$0x3] }
0x1cb1   :  { %1263 = vrot.lane.b32.xlu1 %v1176_v51, %s2740_s8 }
0x1d1f   :  { %v1179_v53 = vpop.permute.xlu0 %1178 }
0x1d20   :  { %v1181_v54 = vsel %vm1054_vm5, %v1174_v52, %v1179_v53 }
0x1d21   :  { %2425 = vmatmul.mubr.msk.f32.vlgmr.msra.gmra.mxu1 %vm1062_vm6, %v1181_v54 }
0x1d22   :  { %2447 = vmatpush3.msra.mxu1 %v3042_v1  ;;  %2462 = vmatprep.mubr.msk.f32.mxu1 %vm2738_vm1, %v2737_v0 }
0x1d23   :  { %2448 = vmatprep.subr.mxu1 %v2737_v0  ;;  %v1264_v5 = vpop.permute.xlu1 %1263 }
0x1d24   :  { %2449 = vmatpush3.msra.mxu1 %v3047_v18 }
0x1d25   :  { %2450 = vmatprep.subr.mxu1 %v2737_v0 }
0x1d26   :  { %2451 = vmatpush3.msra.mxu1 %v3055_v20 }
0x1d27   :  { %2452 = vmatprep.subr.mxu1 %v2737_v0 }
0x1d28   :  { %2453 = vmatpush3.msra.mxu1 %v3065_v4 }
0x1d29   :  { %2454 = vmatprep.subr.mxu1 %v2737_v0 }
0x1d2a   :  { %2455 = vmatpush3.msra.mxu1 %v3073_v21 }
0x1d2b   :  { %2456 = vmatprep.subr.mxu1 %v2737_v0 }
0x1d2c   :  { %2457 = vmatpush3.msra.mxu1 %v3083_v6 }
0x1d2d   :  { %2458 = vmatprep.subr.mxu1 %v2737_v0 }
0x1d2e   :  { %2459 = vmatpush3.msra.mxu1 %v3091_v22 }
0x1d2f   :  { %2460 = vmatprep.subr.mxu1 %v2737_v0 }
0x1d30   :  { %2461 = vmatpush3.msra.mxu1 %v3107_v23 }
0x1d31   :  { %2484 = vmatprep.subr.mxu1 %v2737_v0 }
0x1de1   :  { %v1251_v55 = vpop.f32.mrf.mxu1 }
0x1de2   :  { %v1252_v56 = vadd.f32 %v3145_v30, %v1251_v55 }
0x1de3   :  { %v2426_v57 = vpop.f32.mrf.mxu1 }
0x1de4   :  { %2634 = vtanh.f32 %v1252_v56  ;;  %v2145_v59 = vmul.f32 -1.442695, %v1252_v56 }
0x1de6   :  { %2636 = vpow2.f32 %v2145_v59 }
0x1df1   :  { %v2635_v58 = vpop.eup %2634 }
0x1df2   :  { %1268 = vrot.lane.b32.xlu0 %v2635_v58, %s2741_s13 }
0x1df3   :  { %v2637_v60 = vpop.eup %2636 }
0x1df4   :  { %v1258_v61 = vadd.f32 1.0, %v2637_v60 }
0x1df6   :  { %2638 = vrcp.f32 %v1258_v61 }
0x1e03   :  { %v2639_v62 = vpop.eup %2638 }
0x1e04   :  { %v1266_v8 = vmul.f32 %v2639_v62, %v1264_v5 }
0x1e64   :  { %v1269_v63 = vpop.permute.xlu0 %1268 }
0x1e65   :  { %v1271_v3 = vmul.f32 %v2639_v62, %v1269_v63 }
0x1e67   :  { %1273 = vrot.lane.b32.xlu0 %v1271_v3, %s2740_s8 }
0x1ed9   :  { %v1274_v9 = vpop.permute.xlu0 %1273 }
0x1eda   :  { %v1276_v10 = vadd.f32 %v1274_v9, %v1266_v8 }
0x1edc   :  { %2640 = vtanh.f32 %v1276_v10 }
0x1ee9   :  { %v2641_v12 = vpop.eup %2640 }
0x1eea   :  { %1279 = vrot.lane.b32.xlu1 %v2641_v12, %s2741_s13 }
0x1f5c   :  { %v1280_v13 = vpop.permute.xlu1 %1279 }
0x1f5d   :  { %v1282_v14 = vmul.f32 %v2639_v62, %v1280_v13  ;;  %v1531_v13 = vld [vmem:[#allocation4 + $0x8] sm:$0x3] }
0x1f5f   :  { %1289 = vrot.lane.b32.xlu0 %v1282_v14, %s2740_s8 }
0x1f63   :  { %1284 = vrot.lane.b32.xlu0 %v1276_v10, %s2742_s2 }
0x1fd1   :  { %v1290_v15 = vpop.permute.xlu0 %1289 }
0x1fd2   :  { %1292 = vst.msk [vmem:[#allocation2] sm:$0x3] %vm47_vm0, %v1290_v15 }
0x1fd5   :  { %v1285_v16 = vpop.permute.xlu0 %1284 }
0x1fd6   :  { %1287 = vst.msk [vmem:[#allocation3] sm:$0x3] %vm47_vm0, %v1285_v16 }
0x1fd9   :  { %v1294_v17 = vld [vmem:[#allocation2] sm:$0x3] }
0x1fda   :  { %1297 = vrot.lane.b32.xlu1 %v1294_v17, %s2740_s8 }
0x1fdd   :  { %v1295_v11 = vld [vmem:[#allocation3] sm:$0x3] }
0x1fde   :  { %1382 = vrot.lane.b32.xlu0 %v1295_v11, %s2740_s8 }
0x204c   :  { %v1298_v2 = vpop.permute.xlu1 %1297 }
0x204d   :  { %v1300_v7 = vsel %vm1054_vm5, %v1293_v19, %v1298_v2 }
0x204e   :  { %2444 = vmatmul.mubr.msk.f32.vlgmr.msra.gmra.mxu0 %vm1062_vm6, %v1300_v7 }
0x204f   :  { %2466 = vmatpush3.msra.mxu0 %v3042_v1  ;;  %2481 = vmatprep.mubr.msk.f32.mxu0 %vm2738_vm1, %v2737_v0 }
0x2050   :  { %2467 = vmatprep.subr.mxu0 %v2737_v0  ;;  %v1383_v35 = vpop.permute.xlu0 %1382 }
0x2051   :  { %2468 = vmatpush3.msra.mxu0 %v3047_v18 }
0x2052   :  { %2469 = vmatprep.subr.mxu0 %v2737_v0 }
0x2053   :  { %2470 = vmatpush3.msra.mxu0 %v3055_v20 }
0x2054   :  { %2471 = vmatprep.subr.mxu0 %v2737_v0 }
0x2055   :  { %2472 = vmatpush3.msra.mxu0 %v3065_v4 }
0x2056   :  { %2473 = vmatprep.subr.mxu0 %v2737_v0 }
0x2057   :  { %2474 = vmatpush3.msra.mxu0 %v3073_v21 }
0x2058   :  { %2475 = vmatprep.subr.mxu0 %v2737_v0 }
0x2059   :  { %2476 = vmatpush3.msra.mxu0 %v3083_v6 }
0x205a   :  { %2477 = vmatprep.subr.mxu0 %v2737_v0 }
0x205b   :  { %2478 = vmatpush3.msra.mxu0 %v3091_v22 }
0x205c   :  { %2479 = vmatprep.subr.mxu0 %v2737_v0 }
0x205d   :  { %2480 = vmatpush3.msra.mxu0 %v3107_v23 }
0x205e   :  { %2503 = vmatprep.subr.mxu0 %v2737_v0 }
0x210e   :  { %v1370_v24 = vpop.f32.mrf.mxu0 }
0x210f   :  { %v1371_v25 = vadd.f32 %v3145_v30, %v1370_v24 }
0x2110   :  { %v2445_v26 = vpop.f32.mrf.mxu0 }
0x2111   :  { %2642 = vtanh.f32 %v1371_v25  ;;  %v2147_v28 = vmul.f32 -1.442695, %v1371_v25 }
0x2113   :  { %2644 = vpow2.f32 %v2147_v28 }
0x211e   :  { %v2643_v27 = vpop.eup %2642 }
0x211f   :  { %1387 = vrot.lane.b32.xlu1 %v2643_v27, %s2741_s13 }
0x2120   :  { %v2645_v29 = vpop.eup %2644 }
0x2121   :  { %v1377_v31 = vadd.f32 1.0, %v2645_v29 }
0x2123   :  { %2646 = vrcp.f32 %v1377_v31 }
0x2130   :  { %v2647_v32 = vpop.eup %2646 }
0x2131   :  { %v1385_v36 = vmul.f32 %v2647_v32, %v1383_v35 }
0x2191   :  { %v1388_v33 = vpop.permute.xlu1 %1387 }
0x2192   :  { %v1390_v34 = vmul.f32 %v2647_v32, %v1388_v33 }
0x2194   :  { %1392 = vrot.lane.b32.xlu1 %v1390_v34, %s2740_s8 }
0x2206   :  { %v1393_v37 = vpop.permute.xlu1 %1392 }
0x2207   :  { %v1395_v38 = vadd.f32 %v1393_v37, %v1385_v36 }
0x2209   :  { %2648 = vtanh.f32 %v1395_v38 }
0x2216   :  { %v2649_v39 = vpop.eup %2648 }
0x2217   :  { %1398 = vrot.lane.b32.xlu0 %v2649_v39, %s2741_s13 }
0x2289   :  { %v1399_v40 = vpop.permute.xlu0 %1398 }
0x228a   :  { %v1401_v41 = vmul.f32 %v2647_v32, %v1399_v40  ;;  %v1650_v40 = vld [vmem:[#allocation4 + $0xa] sm:$0x3] }
0x228c   :  { %1408 = vrot.lane.b32.xlu1 %v1401_v41, %s2740_s8 }
0x2290   :  { %1403 = vrot.lane.b32.xlu1 %v1395_v38, %s2742_s2 }
0x22fe   :  { %v1409_v42 = vpop.permute.xlu1 %1408 }
0x22ff   :  { %1411 = vst.msk [vmem:[#allocation2] sm:$0x3] %vm47_vm0, %v1409_v42 }
0x2302   :  { %v1404_v43 = vpop.permute.xlu1 %1403 }
0x2303   :  { %1406 = vst.msk [vmem:[#allocation3] sm:$0x3] %vm47_vm0, %v1404_v43 }
0x2306   :  { %v1413_v44 = vld [vmem:[#allocation2] sm:$0x3] }
0x2307   :  { %1416 = vrot.lane.b32.xlu0 %v1413_v44, %s2740_s8 }
0x230a   :  { %v1414_v45 = vld [vmem:[#allocation3] sm:$0x3] }
0x230b   :  { %1501 = vrot.lane.b32.xlu1 %v1414_v45, %s2740_s8 }
0x2379   :  { %v1417_v47 = vpop.permute.xlu0 %1416 }
0x237a   :  { %v1419_v48 = vsel %vm1054_vm5, %v1412_v46, %v1417_v47 }
0x237b   :  { %2463 = vmatmul.mubr.msk.f32.vlgmr.msra.gmra.mxu1 %vm1062_vm6, %v1419_v48 }
0x237c   :  { %2485 = vmatpush3.msra.mxu1 %v3042_v1  ;;  %2500 = vmatprep.mubr.msk.f32.mxu1 %vm2738_vm1, %v2737_v0 }
0x237d   :  { %2486 = vmatprep.subr.mxu1 %v2737_v0  ;;  %v1502_v59 = vpop.permute.xlu1 %1501 }
0x237e   :  { %2487 = vmatpush3.msra.mxu1 %v3047_v18 }
0x237f   :  { %2488 = vmatprep.subr.mxu1 %v2737_v0 }
0x2380   :  { %2489 = vmatpush3.msra.mxu1 %v3055_v20 }
0x2381   :  { %2490 = vmatprep.subr.mxu1 %v2737_v0 }
0x2382   :  { %2491 = vmatpush3.msra.mxu1 %v3065_v4 }
0x2383   :  { %2492 = vmatprep.subr.mxu1 %v2737_v0 }
0x2384   :  { %2493 = vmatpush3.msra.mxu1 %v3073_v21 }
0x2385   :  { %2494 = vmatprep.subr.mxu1 %v2737_v0 }
0x2386   :  { %2495 = vmatpush3.msra.mxu1 %v3083_v6 }
0x2387   :  { %2496 = vmatprep.subr.mxu1 %v2737_v0 }
0x2388   :  { %2497 = vmatpush3.msra.mxu1 %v3091_v22 }
0x2389   :  { %2498 = vmatprep.subr.mxu1 %v2737_v0 }
0x238a   :  { %2499 = vmatpush3.msra.mxu1 %v3107_v23 }
0x238b   :  { %2522 = vmatprep.subr.mxu1 %v2737_v0 }
0x243b   :  { %v1489_v49 = vpop.f32.mrf.mxu1 }
0x243c   :  { %v1490_v50 = vadd.f32 %v3145_v30, %v1489_v49 }
0x243d   :  { %v2464_v51 = vpop.f32.mrf.mxu1 }
0x243e   :  { %2650 = vtanh.f32 %v1490_v50  ;;  %v2149_v53 = vmul.f32 -1.442695, %v1490_v50 }
0x2440   :  { %2652 = vpow2.f32 %v2149_v53 }
0x244b   :  { %v2651_v52 = vpop.eup %2650 }
0x244c   :  { %1506 = vrot.lane.b32.xlu0 %v2651_v52, %s2741_s13 }
0x244d   :  { %v2653_v54 = vpop.eup %2652 }
0x244e   :  { %v1496_v55 = vadd.f32 1.0, %v2653_v54 }
0x2450   :  { %2654 = vrcp.f32 %v1496_v55 }
0x245d   :  { %v2655_v56 = vpop.eup %2654 }
0x245e   :  { %v1504_v60 = vmul.f32 %v2655_v56, %v1502_v59 }
0x24be   :  { %v1507_v57 = vpop.permute.xlu0 %1506 }
0x24bf   :  { %v1509_v58 = vmul.f32 %v2655_v56, %v1507_v57 }
0x24c1   :  { %1511 = vrot.lane.b32.xlu0 %v1509_v58, %s2740_s8 }
0x2533   :  { %v1512_v61 = vpop.permute.xlu0 %1511 }
0x2534   :  { %v1514_v62 = vadd.f32 %v1512_v61, %v1504_v60 }
0x2536   :  { %2656 = vtanh.f32 %v1514_v62 }
0x2543   :  { %v2657_v63 = vpop.eup %2656 }
0x2544   :  { %1517 = vrot.lane.b32.xlu1 %v2657_v63, %s2741_s13 }
0x25b6   :  { %v1518_v3 = vpop.permute.xlu1 %1517 }
0x25b7   :  { %v1520_v5 = vmul.f32 %v2655_v56, %v1518_v3  ;;  %v1769_v56 = vld [vmem:[#allocation4 + $0xc] sm:$0x3] }
0x25b9   :  { %1527 = vrot.lane.b32.xlu0 %v1520_v5, %s2740_s8 }
0x25bd   :  { %1522 = vrot.lane.b32.xlu0 %v1514_v62, %s2742_s2 }
0x262b   :  { %v1528_v8 = vpop.permute.xlu0 %1527 }
0x262c   :  { %1530 = vst.msk [vmem:[#allocation2] sm:$0x3] %vm47_vm0, %v1528_v8 }
0x262f   :  { %v1523_v9 = vpop.permute.xlu0 %1522 }
0x2630   :  { %1525 = vst.msk [vmem:[#allocation3] sm:$0x3] %vm47_vm0, %v1523_v9 }
0x2633   :  { %v1532_v10 = vld [vmem:[#allocation2] sm:$0x3] }
0x2634   :  { %1535 = vrot.lane.b32.xlu1 %v1532_v10, %s2740_s8 }
0x2637   :  { %v1533_v12 = vld [vmem:[#allocation3] sm:$0x3] }
0x2638   :  { %1620 = vrot.lane.b32.xlu0 %v1533_v12, %s2740_s8 }
0x26a6   :  { %v1536_v14 = vpop.permute.xlu1 %1535 }
0x26a7   :  { %v1538_v15 = vsel %vm1054_vm5, %v1531_v13, %v1536_v14 }
0x26a8   :  { %2482 = vmatmul.mubr.msk.f32.vlgmr.msra.gmra.mxu0 %vm1062_vm6, %v1538_v15 }
0x26a9   :  { %2504 = vmatpush3.msra.mxu0 %v3042_v1  ;;  %2519 = vmatprep.mubr.msk.f32.mxu0 %vm2738_vm1, %v2737_v0 }
0x26aa   :  { %2505 = vmatprep.subr.mxu0 %v2737_v0  ;;  %v1621_v28 = vpop.permute.xlu0 %1620 }
0x26ab   :  { %2506 = vmatpush3.msra.mxu0 %v3047_v18 }
0x26ac   :  { %2507 = vmatprep.subr.mxu0 %v2737_v0 }
0x26ad   :  { %2508 = vmatpush3.msra.mxu0 %v3055_v20 }
0x26ae   :  { %2509 = vmatprep.subr.mxu0 %v2737_v0 }
0x26af   :  { %2510 = vmatpush3.msra.mxu0 %v3065_v4 }
0x26b0   :  { %2511 = vmatprep.subr.mxu0 %v2737_v0 }
0x26b1   :  { %2512 = vmatpush3.msra.mxu0 %v3073_v21 }
0x26b2   :  { %2513 = vmatprep.subr.mxu0 %v2737_v0 }
0x26b3   :  { %2514 = vmatpush3.msra.mxu0 %v3083_v6 }
0x26b4   :  { %2515 = vmatprep.subr.mxu0 %v2737_v0 }
0x26b5   :  { %2516 = vmatpush3.msra.mxu0 %v3091_v22 }
0x26b6   :  { %2517 = vmatprep.subr.mxu0 %v2737_v0 }
0x26b7   :  { %2518 = vmatpush3.msra.mxu0 %v3107_v23 }
0x26b8   :  { %2541 = vmatprep.subr.mxu0 %v2737_v0 }
0x2768   :  { %v1608_v16 = vpop.f32.mrf.mxu0 }
0x2769   :  { %v1609_v17 = vadd.f32 %v3145_v30, %v1608_v16 }
0x276a   :  { %v2483_v11 = vpop.f32.mrf.mxu0 }
0x276b   :  { %2658 = vtanh.f32 %v1609_v17  ;;  %v2151_v2 = vmul.f32 -1.442695, %v1609_v17 }
0x276d   :  { %2660 = vpow2.f32 %v2151_v2 }
0x2778   :  { %v2659_v19 = vpop.eup %2658 }
0x2779   :  { %1625 = vrot.lane.b32.xlu1 %v2659_v19, %s2741_s13 }
0x277a   :  { %v2661_v7 = vpop.eup %2660 }
0x277b   :  { %v1615_v24 = vadd.f32 1.0, %v2661_v7 }
0x277d   :  { %2662 = vrcp.f32 %v1615_v24 }
0x278a   :  { %v2663_v25 = vpop.eup %2662 }
0x278b   :  { %v1623_v29 = vmul.f32 %v2663_v25, %v1621_v28 }
0x27eb   :  { %v1626_v26 = vpop.permute.xlu1 %1625 }
0x27ec   :  { %v1628_v27 = vmul.f32 %v2663_v25, %v1626_v26 }
0x27ee   :  { %1630 = vrot.lane.b32.xlu1 %v1628_v27, %s2740_s8 }
0x2860   :  { %v1631_v31 = vpop.permute.xlu1 %1630 }
0x2861   :  { %v1633_v32 = vadd.f32 %v1631_v31, %v1623_v29 }
0x2863   :  { %2664 = vtanh.f32 %v1633_v32 }
0x2870   :  { %v2665_v33 = vpop.eup %2664 }
0x2871   :  { %1636 = vrot.lane.b32.xlu0 %v2665_v33, %s2741_s13 }
0x28e3   :  { %v1637_v34 = vpop.permute.xlu0 %1636 }
0x28e4   :  { %v1639_v35 = vmul.f32 %v2663_v25, %v1637_v34  ;;  %v1888_v25 = vld [vmem:[#allocation4 + $0xe] sm:$0x3] }
0x28e6   :  { %1646 = vrot.lane.b32.xlu1 %v1639_v35, %s2740_s8 }
0x28ea   :  { %1641 = vrot.lane.b32.xlu1 %v1633_v32, %s2742_s2 }
0x2958   :  { %v1647_v36 = vpop.permute.xlu1 %1646 }
0x2959   :  { %1649 = vst.msk [vmem:[#allocation2] sm:$0x3] %vm47_vm0, %v1647_v36 }
0x295c   :  { %v1642_v37 = vpop.permute.xlu1 %1641 }
0x295d   :  { %1644 = vst.msk [vmem:[#allocation3] sm:$0x3] %vm47_vm0, %v1642_v37 }
0x2960   :  { %v1651_v38 = vld [vmem:[#allocation2] sm:$0x3] }
0x2961   :  { %1654 = vrot.lane.b32.xlu0 %v1651_v38, %s2740_s8 }
0x2964   :  { %v1652_v39 = vld [vmem:[#allocation3] sm:$0x3] }
0x2965   :  { %1739 = vrot.lane.b32.xlu1 %v1652_v39, %s2740_s8 }
0x29d3   :  { %v1655_v41 = vpop.permute.xlu0 %1654 }
0x29d4   :  { %v1657_v42 = vsel %vm1054_vm5, %v1650_v40, %v1655_v41 }
0x29d5   :  { %2501 = vmatmul.mubr.msk.f32.vlgmr.msra.gmra.mxu1 %vm1062_vm6, %v1657_v42 }
0x29d6   :  { %2523 = vmatpush3.msra.mxu1 %v3042_v1  ;;  %2538 = vmatprep.mubr.msk.f32.mxu1 %vm2738_vm1, %v2737_v0 }
0x29d7   :  { %2524 = vmatprep.subr.mxu1 %v2737_v0  ;;  %v1740_v46 = vpop.permute.xlu1 %1739 }
0x29d8   :  { %2525 = vmatpush3.msra.mxu1 %v3047_v18 }
0x29d9   :  { %2526 = vmatprep.subr.mxu1 %v2737_v0 }
0x29da   :  { %2527 = vmatpush3.msra.mxu1 %v3055_v20 }
0x29db   :  { %2528 = vmatprep.subr.mxu1 %v2737_v0 }
0x29dc   :  { %2529 = vmatpush3.msra.mxu1 %v3065_v4 }
0x29dd   :  { %2530 = vmatprep.subr.mxu1 %v2737_v0 }
0x29de   :  { %2531 = vmatpush3.msra.mxu1 %v3073_v21 }
0x29df   :  { %2532 = vmatprep.subr.mxu1 %v2737_v0 }
0x29e0   :  { %2533 = vmatpush3.msra.mxu1 %v3083_v6 }
0x29e1   :  { %2534 = vmatprep.subr.mxu1 %v2737_v0 }
0x29e2   :  { %2535 = vmatpush3.msra.mxu1 %v3091_v22 }
0x29e3   :  { %2536 = vmatprep.subr.mxu1 %v2737_v0 }
0x29e4   :  { %2537 = vmatpush3.msra.mxu1 %v3107_v23 }
0x2a95   :  { %v1727_v1 = vpop.f32.mrf.mxu1 }
0x2a96   :  { %v1728_v18 = vadd.f32 %v3145_v30, %v1727_v1  ;;  %v2011_v1 = vld [vmem:[%s3357_s5 + $0x18] sm:$0xff] }
0x2a97   :  { %v2502_v20 = vpop.f32.mrf.mxu1 }
0x2a98   :  { %2666 = vtanh.f32 %v1728_v18  ;;  %v2153_v21 = vmul.f32 -1.442695, %v1728_v18  ;;  %v2010_v18 = vld [vmem:[%s3357_s5 + $0x10] sm:$0xff]  ;;  %v2009_v20 = vld [vmem:[%s3357_s5 + $0x8] sm:$0xff] }
0x2a9a   :  { %2668 = vpow2.f32 %v2153_v21 }
0x2aa5   :  { %v2667_v4 = vpop.eup %2666 }
0x2aa6   :  { %1744 = vrot.lane.b32.xlu0 %v2667_v4, %s2741_s13  ;;  %v2008_v4 = vld [vmem:[%s3357_s5] sm:$0xff]  ;;  %s2743_s5 = smov [#allocation8]  }
0x2aa7   :  { %v2669_v43 = vpop.eup %2668  ;;  %s2100_s28 = sshll.u32 %s2743_s5, 4  ;;  %s2101_s28 = int_to_ptr.vmem [resolvable:$true] %s2100_s28 }
0x2aa8   :  { %v1734_v6 = vadd.f32 1.0, %v2669_v43  ;;  %p2715_p6 = scmp.lt.s32.totalorder %s2101_s28, %s2101_s28 }
0x2aaa   :  { %2670 = vrcp.f32 %v1734_v6 }
0x2ab7   :  { %v2671_v44 = vpop.eup %2670 }
0x2ab8   :  { %v1742_v23 = vmul.f32 %v2671_v44, %v1740_v46 }
0x2b18   :  { %v1745_v45 = vpop.permute.xlu0 %1744 }
0x2b19   :  { %v1747_v22 = vmul.f32 %v2671_v44, %v1745_v45 }
0x2b1b   :  { %1749 = vrot.lane.b32.xlu0 %v1747_v22, %s2740_s8  ;;  %v2158_v22 = vld [vmem:[%s3358_s6] ss:$0 sm:$0xff] }
0x2b8d   :  { %v1750_v47 = vpop.permute.xlu0 %1749 }
0x2b8e   :  { %v1752_v48 = vadd.f32 %v1750_v47, %v1742_v23 }
0x2b90   :  { %2672 = vtanh.f32 %v1752_v48 }
0x2b9d   :  { %v2673_v49 = vpop.eup %2672 }
0x2b9e   :  { %1755 = vrot.lane.b32.xlu1 %v2673_v49, %s2741_s13 }
0x2c10   :  { %v1756_v50 = vpop.permute.xlu1 %1755 }
0x2c11   :  { %v1758_v51 = vmul.f32 %v2671_v44, %v1756_v50 }
0x2c13   :  { %1765 = vrot.lane.b32.xlu0 %v1758_v51, %s2740_s8 }
0x2c17   :  { %1760 = vrot.lane.b32.xlu0 %v1752_v48, %s2742_s2 }
0x2c85   :  { %v1766_v52 = vpop.permute.xlu0 %1765 }
0x2c86   :  { %1768 = vst.msk [vmem:[#allocation2] sm:$0x3] %vm47_vm0, %v1766_v52 }
0x2c89   :  { %v1761_v53 = vpop.permute.xlu0 %1760 }
0x2c8a   :  { %1763 = vst.msk [vmem:[#allocation3] sm:$0x3] %vm47_vm0, %v1761_v53 }
0x2c8d   :  { %v1770_v54 = vld [vmem:[#allocation2] sm:$0x3] }
0x2c8e   :  { %1773 = vrot.lane.b32.xlu1 %v1770_v54, %s2740_s8 }
0x2c91   :  { %v1771_v55 = vld [vmem:[#allocation3] sm:$0x3] }
0x2c92   :  { %1858 = vrot.lane.b32.xlu0 %v1771_v55, %s2740_s8 }
0x2d00   :  { %v1774_v57 = vpop.permute.xlu1 %1773 }
0x2d01   :  { %v1776_v58 = vsel %vm1054_vm5, %v1769_v56, %v1774_v57 }
0x2d02   :  { %2520 = vmatmul.mubr.msk.f32.vlgmr.msra.gmra.mxu0 %vm1062_vm6, %v1776_v58 }
0x2d03   :  { %2549 = vmatprep.mubr.msk.f32.mxu0 %vm2738_vm1, %v2737_v0  ;;  %2542 = vmatpush3.msra.mxu0 %v2011_v1 }
0x2d04   :  { %v1859_v12 = vpop.permute.xlu0 %1858  ;;  %2543 = vmatprep.subr.mxu0 %v2737_v0 }
0x2d05   :  { %2544 = vmatpush3.msra.mxu0 %v2010_v18 }
0x2d06   :  { %2545 = vmatprep.subr.mxu0 %v2737_v0 }
0x2d07   :  { %2546 = vmatpush3.msra.mxu0 %v2009_v20 }
0x2d08   :  { %2547 = vmatprep.subr.mxu0 %v2737_v0 }
0x2d09   :  { %2548 = vmatpush3.msra.mxu0 %v2008_v4 }
0x2dc2   :  { %v1846_v59 = vpop.f32.mrf.mxu0 }
0x2dc3   :  { %v1847_v60 = vadd.f32 %v3145_v30, %v1846_v59 }
0x2dc4   :  { %v2521_v61 = vpop.f32.mrf.mxu0 }
0x2dc5   :  { %2674 = vtanh.f32 %v1847_v60  ;;  %v2155_v63 = vmul.f32 -1.442695, %v1847_v60 }
0x2dc7   :  { %2676 = vpow2.f32 %v2155_v63 }
0x2dd2   :  { %v2675_v62 = vpop.eup %2674 }
0x2dd3   :  { %1863 = vrot.lane.b32.xlu1 %v2675_v62, %s2741_s13 }
0x2dd4   :  { %v2677_v3 = vpop.eup %2676 }
0x2dd5   :  { %v1853_v5 = vadd.f32 1.0, %v2677_v3 }
0x2dd7   :  { %2678 = vrcp.f32 %v1853_v5 }
0x2de4   :  { %v2679_v8 = vpop.eup %2678 }
0x2de5   :  { %v1861_v13 = vmul.f32 %v2679_v8, %v1859_v12 }
0x2e45   :  { %v1864_v9 = vpop.permute.xlu1 %1863 }
0x2e46   :  { %v1866_v10 = vmul.f32 %v2679_v8, %v1864_v9 }
0x2e48   :  { %1868 = vrot.lane.b32.xlu1 %v1866_v10, %s2740_s8 }
0x2eba   :  { %v1869_v14 = vpop.permute.xlu1 %1868 }
0x2ebb   :  { %v1871_v15 = vadd.f32 %v1869_v14, %v1861_v13 }
0x2ebd   :  { %2680 = vtanh.f32 %v1871_v15 }
0x2eca   :  { %v2681_v16 = vpop.eup %2680 }
0x2ecb   :  { %1874 = vrot.lane.b32.xlu0 %v2681_v16, %s2741_s13 }
0x2f3d   :  { %v1875_v17 = vpop.permute.xlu0 %1874 }
0x2f3e   :  { %v1877_v11 = vmul.f32 %v2679_v8, %v1875_v17 }
0x2f40   :  { %1884 = vrot.lane.b32.xlu1 %v1877_v11, %s2740_s8 }
0x2f44   :  { %1879 = vrot.lane.b32.xlu1 %v1871_v15, %s2742_s2 }
0x2fb2   :  { %v1885_v19 = vpop.permute.xlu1 %1884 }
0x2fb3   :  { %1887 = vst.msk [vmem:[#allocation2] sm:$0x3] %vm47_vm0, %v1885_v19 }
0x2fb6   :  { %v1880_v2 = vpop.permute.xlu1 %1879 }
0x2fb7   :  { %1882 = vst.msk [vmem:[#allocation3] sm:$0x3] %vm47_vm0, %v1880_v2 }
0x2fba   :  { %v1889_v7 = vld [vmem:[#allocation2] sm:$0x3] }
0x2fbb   :  { %1892 = vrot.lane.b32.xlu0 %v1889_v7, %s2740_s8 }
0x2fbe   :  { %v1890_v24 = vld [vmem:[#allocation3] sm:$0x3] }
0x2fbf   :  { %1977 = vrot.lane.b32.xlu1 %v1890_v24, %s2740_s8 }
0x302d   :  { %v1893_v26 = vpop.permute.xlu0 %1892 }
0x302e   :  { %v1895_v27 = vsel %vm1054_vm5, %v1888_v25, %v1893_v26 }
0x302f   :  { %2539 = vmatmul.mubr.msk.f32.vlgmr.msra.gmra.mxu1 %vm1062_vm6, %v1895_v27 }
0x3031   :  { %v1978_v39 = vpop.permute.xlu1 %1977 }
0x30ef   :  { %v1965_v28 = vpop.f32.mrf.mxu1 }
0x30f0   :  { %v1966_v29 = vadd.f32 %v3145_v30, %v1965_v28 }
0x30f1   :  { %v2540_v31 = vpop.f32.mrf.mxu1 }
0x30f2   :  { %2682 = vtanh.f32 %v1966_v29  ;;  %v2157_v33 = vmul.f32 -1.442695, %v1966_v29 }
0x30f4   :  { %2684 = vpow2.f32 %v2157_v33 }
0x30ff   :  { %v2683_v32 = vpop.eup %2682 }
0x3100   :  { %1982 = vrot.lane.b32.xlu0 %v2683_v32, %s2741_s13 }
0x3101   :  { %v2685_v34 = vpop.eup %2684 }
0x3102   :  { %v1972_v35 = vadd.f32 1.0, %v2685_v34 }
0x3104   :  { %2686 = vrcp.f32 %v1972_v35 }
0x3111   :  { %v2687_v36 = vpop.eup %2686 }
0x3112   :  { %v1980_v40 = vmul.f32 %v2687_v36, %v1978_v39 }
0x3172   :  { %v1983_v37 = vpop.permute.xlu0 %1982 }
0x3173   :  { %v1985_v38 = vmul.f32 %v2687_v36, %v1983_v37 }
0x3175   :  { %1987 = vrot.lane.b32.xlu0 %v1985_v38, %s2740_s8 }
0x31e7   :  { %v1988_v41 = vpop.permute.xlu0 %1987 }
0x31e8   :  { %v1990_v42 = vadd.f32 %v1988_v41, %v1980_v40 }
0x31ea   :  { %2688 = vtanh.f32 %v1990_v42 }
0x31f7   :  { %v2689_v30 = vpop.eup %2688 }
0x31f8   :  { %1993 = vrot.lane.b32.xlu1 %v2689_v30, %s2741_s13 }
0x31fc   :  { %1998 = vrot.lane.b32.xlu1 %v1990_v42, %s2742_s2 }
0x326a   :  { %v1994_v21 = vpop.permute.xlu1 %1993 }
0x326b   :  { %v1996_v43 = vmul.f32 %v2687_v36, %v1994_v21 }
0x326d   :  { %2003 = vrot.lane.b32.xlu0 %v1996_v43, %s2740_s8  ;;  %s2710_s8 = scalar_lea.vmem %s2101_s28, 32 }
0x326e   :  { %v1999_v6 = vpop.permute.xlu1 %1998  ;;  %p2711_p5 = scmp.ne.s32.totalorder %s2101_s28, %s2710_s8  ;;  %p2716_p7 = scmp.lt.s32.totalorder %s2710_s8, %s2710_s8 }
0x326f   :  { %2001 = vst.msk [vmem:[#allocation3] sm:$0x3] %vm47_vm0, %v1999_v6 }
0x3270   :  { %p2717_p8 = por %p2716_p7, %p2715_p6 }
0x3272   :  { %p2718_p9 = pnand %p2717_p8, %p2711_p5 }
0x32df   :  { %v2004_v44 = vpop.permute.xlu0 %2003 }
0x32e0   :  { %2006 = vst.msk [vmem:[#allocation2] sm:$0x3] %vm47_vm0, %v2004_v44 }
0x32e7   :  { %v2007_v45 = vld [vmem:[#allocation2] sm:$0x3] }
0x32e8   :  { %2550 = vmatmul.mubr.msk.f32.vlgmr.msra.gmra.mxu0 %vm1054_vm5, %v2007_v45 }
0x33a8   :  { %v2088_v0 = vpop.f32.mrf.mxu0 }
0x33a9   :  { %v2089_v46 = vadd.f32 %v2158_v22, %v2088_v0 }
0x33aa   :  { %v2551_v23 = vpop.f32.mrf.mxu0 }
0x33ab   :  { %2093 = vst.msk [vmem:[#allocation8] sm:$0x3] %vm2092_vm7, %v2089_v46 }
0x33ac   :  { %2721 = shalt.err (!%p2718_p9)
}
0x33ad   :  { %2103 = dma.vmem_to_hbm [thread:$0]  %s2101_s28, 32, %s3359_s7, [#allocation7]  }
0x33ae   :  { %2732 = dma.done.wait [#allocation7], 32  }
0x33af   :  { %2733 = vsyncadd [#allocation7], 4294967264 }
0x33b0   :  { %2107 = vsyncpa [#allocation6], 1 }
0x33b1   :  { %2108 = vsyncpa [#allocation7], 1 }

</bundles_post_ra>
